<compile_context>
chip_gen: v6e
topology: v6e:2x2x1
jax: 0.10.0
libtpu: 0.0.40
codegen_flags: <defaults>
</compile_context>

<pallas_src>
import functools

import jax
import jax.numpy as jnp
from jax.experimental import pallas as pl
from jax.experimental.pallas import tpu as pltpu

_LANES = 128          # lane-dense channel padding granularity
_EW_ROWS = 4096       # rows per block in the elementwise BN-apply pass (~2 MiB f32 out)
_ACC_ROWS = 2048      # max rows of the in-kernel f32 conv accumulator chunk


def _round_up(x, m):
    return ((x + m - 1) // m) * m


def _default_vmem_limit():
    # ~48 MiB on v7x (64 MiB physical), up to 96 MiB on v5e/v6e (128 MiB physical).
    try:
        cap = int(pltpu.get_tpu_info().vmem_capacity_bytes)
    except Exception:
        cap = 64 * 1024 * 1024
    return max(32 * 1024 * 1024, min((cap * 3) // 4, 96 * 1024 * 1024))


_VMEM_LIMIT = _default_vmem_limit()


# --------------- conv3x3 (+bias) with fused BN partial stats / fused ReLU ---------------

def _conv3x3_kernel(x_ref, w_ref, b_ref, y_ref, s_ref, ss_ref, *,
                    ho, wo, row_chunk, add_bias, fuse_relu, compute_stats):
    """One (output-channel tile, batch element) grid step.

    x_ref : (1, Hp, Wp, Cin)     bf16, spatially zero-padded input image
    w_ref : (3, 3*Cin, TN)       bf16, kernel-row-major weights (column taps merged into K)
    b_ref : (1, TN)              f32 bias
    y_ref : (1, Ho, Wo, TN)      conv (+bias, optional ReLU) output
    s_ref, ss_ref : (1, 1, TN)   f32 per-block partial sum / sum-of-squares (BN stats)
    """
    k = w_ref.shape[1]            # 3 * Cin
    tn = w_ref.shape[-1]

    s_vec = jnp.zeros((1, tn), jnp.float32)
    ss_vec = jnp.zeros((1, tn), jnp.float32)

    # Spatial M tiling: bound the f32 accumulator to <= row_chunk * Wo rows.
    for r0 in range(0, ho, row_chunk):
        rows = min(row_chunk, ho - r0)
        acc = jnp.zeros((rows * wo, tn), jnp.float32)
        for a in range(3):        # 3 kernel rows; column taps merged into the K dim
            xs = jnp.concatenate(
                [x_ref[0, r0 + a:r0 + a + rows, c:c + wo, :] for c in range(3)],
                axis=-1).reshape(rows * wo, k)
            acc = acc + jnp.dot(xs, w_ref[a], preferred_element_type=jnp.float32)
        if add_bias:
            acc = acc + b_ref[...]
        if compute_stats:
            # XLU column reduces — essentially free next to the MXU work.
            s_vec = s_vec + jnp.sum(acc, axis=0, keepdims=True)
            ss_vec = ss_vec + jnp.sum(acc * acc, axis=0, keepdims=True)
        if fuse_relu:
            acc = jnp.maximum(acc, 0.0)
        y_ref[0, r0:r0 + rows, :, :] = acc.reshape(rows, wo, tn).astype(y_ref.dtype)

    s_ref[...] = s_vec.reshape(1, 1, tn)
    ss_ref[...] = ss_vec.reshape(1, 1, tn)


def conv3x3_bias(x_nhwc, w, b, padding, *, add_bias, fuse_relu, compute_stats, out_dtype):
    """x_nhwc: (N,H,W,Cin); w: (Cout,Cin,3,3) PyTorch OIHW (cross-correlation, as nn.Conv2d).

    Returns (y, sums, sumsq): y (N,Ho,Wo,Cp), sums/sumsq (N,1,Cp), Cp = Cout rounded up to
    128 lanes (padded channels have zero weight/bias -> zero output, sliced off later).
    """
    n, h, wd, cin = x_nhwc.shape
    cout = w.shape[0]
    ho = h + 2 * padding - 2
    wo = wd + 2 * padding - 2
    hp, wp = h + 2 * padding, wd + 2 * padding
    cp = _round_up(cout, _LANES)
    tn = 256 if cp % 256 == 0 else _LANES      # fill the 256-wide MXU on v6e/v7x

    # TODO(synk): fold the zero-padding + bf16 cast into the kernel (DMA the unpadded image
    # into a pre-zeroed VMEM scratch, or mask border taps) to drop this extra HBM pass; and
    # for very large H*W switch the whole-image input block to H-tiled blocks with halo DMA.
    xp = jnp.pad(x_nhwc.astype(jnp.bfloat16),
                 ((0, 0), (padding, padding), (padding, padding), (0, 0)))

    # (Cout,Cin,3,3) -> (KH,KW,Cin,Cout) -> (3, 3*Cin, Cp): column taps merged into the
    # contraction dim, channels zero-padded for lane-dense stores.
    wm = jnp.transpose(w, (2, 3, 1, 0)).reshape(3, 3 * cin, cout)
    wm = jnp.pad(wm, ((0, 0), (0, 0), (0, cp - cout))).astype(jnp.bfloat16)
    bias = jnp.pad(b, (0, cp - cout)).reshape(1, cp).astype(jnp.float32)

    row_chunk = max(1, min(ho, _ACC_ROWS // max(wo, 1)))

    y, s, ss = pl.pallas_call(
        functools.partial(_conv3x3_kernel, ho=ho, wo=wo, row_chunk=row_chunk,
                          add_bias=add_bias, fuse_relu=fuse_relu,
                          compute_stats=compute_stats),
        out_shape=(jax.ShapeDtypeStruct((n, ho, wo, cp), out_dtype),
                   jax.ShapeDtypeStruct((n, 1, cp), jnp.float32),
                   jax.ShapeDtypeStruct((n, 1, cp), jnp.float32)),
        grid_spec=pltpu.PrefetchScalarGridSpec(
            num_scalar_prefetch=0,
            # Channel-tile axis OUTER, batch INNER: weight/bias block indices are constant
            # along the inner axis, so Pallas keeps them resident (no per-batch re-DMA).
            grid=(cp // tn, n),
            in_specs=[
                pl.BlockSpec((1, hp, wp, cin), lambda j, i: (i, 0, 0, 0)),
                pl.BlockSpec((3, 3 * cin, tn), lambda j, i: (0, 0, j)),
                pl.BlockSpec((1, tn), lambda j, i: (0, j)),
            ],
            out_specs=(
                pl.BlockSpec((1, ho, wo, tn), lambda j, i: (i, 0, 0, j)),
                pl.BlockSpec((1, 1, tn), lambda j, i: (i, 0, j)),
                pl.BlockSpec((1, 1, tn), lambda j, i: (i, 0, j)),
            ),
        ),
        compiler_params=pltpu.CompilerParams(
            dimension_semantics=("parallel", "parallel"),
            vmem_limit_bytes=_VMEM_LIMIT),
    )(xp, wm, bias)
    return y, s, ss


# ------------------------- BN apply + ReLU (one lane-dense pass) -------------------------

def _scale_shift_relu_kernel(x_ref, scale_ref, shift_ref, o_ref):
    xv = x_ref[...].astype(jnp.float32)            # upcast in-kernel (v5e VPU has no bf16)
    o_ref[...] = jnp.maximum(xv * scale_ref[...] + shift_ref[...], 0.0).astype(o_ref.dtype)


def scale_shift_relu(xf, scale, shift, out_dtype=jnp.float32):
    m, c = xf.shape
    bm = m if m <= _EW_ROWS else _EW_ROWS          # big blocks; ragged last block is masked
    return pl.pallas_call(
        _scale_shift_relu_kernel,
        out_shape=jax.ShapeDtypeStruct((m, c), out_dtype),
        grid_spec=pltpu.PrefetchScalarGridSpec(
            num_scalar_prefetch=0,
            grid=(pl.cdiv(m, bm),),
            in_specs=[pl.BlockSpec((bm, c), lambda i: (i, 0)),
                      pl.BlockSpec((1, c), lambda i: (0, 0)),
                      pl.BlockSpec((1, c), lambda i: (0, 0))],
            out_specs=pl.BlockSpec((bm, c), lambda i: (i, 0)),
        ),
        compiler_params=pltpu.CompilerParams(
            dimension_semantics=("parallel",), vmem_limit_bytes=_VMEM_LIMIT),
    )(xf, scale.reshape(1, c).astype(jnp.float32),
      shift.reshape(1, c).astype(jnp.float32))


# ------------------------------------ EncoderLayer ------------------------------------

def encoder_layer(params, x_nchw, *, enable_bn=True, padding=1, eps=1e-5):
    """EncoderLayer forward: Conv2d(3x3, s=1, pad=padding) [+ BatchNorm2d] + ReLU.

    BatchNorm uses batch statistics (training-mode forward of a fresh module) with biased
    variance and eps=1e-5, matching nn.BatchNorm2d.
    """
    n, cin, h, wd = x_nchw.shape
    cout = params["w"].shape[0]
    cp = _round_up(cout, _LANES)

    # TODO(synk): when stacking EncoderLayers, keep activations NHWC / channel-padded
    # across layers and only transpose + slice once at the stack boundaries.
    x = jnp.transpose(x_nchw, (0, 2, 3, 1))        # NCHW -> NHWC

    if enable_bn:
        # Conv on the MXU (bf16 in, f32 acc) with BN partial stats fused into the epilogue.
        # Conv bias is dropped: batch-stat BN exactly cancels a per-channel pre-act bias.
        y, s, ss = conv3x3_bias(x, params["w"], params["b"], padding,
                                add_bias=False, fuse_relu=False,
                                compute_stats=True, out_dtype=jnp.bfloat16)
        n_, ho, wo, _ = y.shape
        m = n_ * ho * wo
        tot = jnp.sum(s, axis=(0, 1))              # (Cp,), tiny cross-block reduction
        tot2 = jnp.sum(ss, axis=(0, 1))
        mean = tot / m
        # E[x^2]-E[x]^2 can go slightly negative in f32 -> clamp before rsqrt.
        var = jnp.maximum(tot2 / m - mean * mean, 0.0)
        gamma = jnp.pad(params["gamma"].astype(jnp.float32), (0, cp - cout),
                        constant_values=1.0)
        beta = jnp.pad(params["beta"].astype(jnp.float32), (0, cp - cout))
        # Padded channels: mean=var=0 -> scale = 1/sqrt(eps) ~ 316; finite and sliced off
        # below, so harmless.
        scale = gamma * jax.lax.rsqrt(var + eps)
        shift = beta - mean * scale
        # Normalize + ReLU: one lane-dense read + write of the activation.  (When chaining
        # layers, pass out_dtype=jnp.bfloat16 to halve the HBM write.)
        out = scale_shift_relu(y.reshape(m, cp), scale, shift, out_dtype=jnp.float32)
        out = out.reshape(n_, ho, wo, cp)
    else:
        out, _, _ = conv3x3_bias(x, params["w"], params["b"], padding,
                                 add_bias=True, fuse_relu=True,
                                 compute_stats=False, out_dtype=jnp.float32)

    out = out[..., :cout]                          # drop lane padding
    return jnp.transpose(out, (0, 3, 1, 2)).astype(x_nchw.dtype)


# ---------------------------------- pure-JAX reference ----------------------------------

def encoder_layer_ref(params, x, *, enable_bn=True, padding=1, eps=1e-5):
    y = jax.lax.conv_general_dilated(
        x.astype(jnp.float32), params["w"].astype(jnp.float32),
        window_strides=(1, 1), padding=[(padding, padding)] * 2,
        dimension_numbers=("NCHW", "OIHW", "NCHW"))
    y = y + params["b"].reshape(1, -1, 1, 1)
    if enable_bn:
        mean = jnp.mean(y, axis=(0, 2, 3), keepdims=True)
        var = jnp.mean(jnp.square(y - mean), axis=(0, 2, 3), keepdims=True)
        y = (y - mean) * jax.lax.rsqrt(var + eps)
        y = y * params["gamma"].reshape(1, -1, 1, 1) + params["beta"].reshape(1, -1, 1, 1)
    return jnp.maximum(y, 0.0)


if __name__ == "__main__":
    key = jax.random.PRNGKey(0)
    kw, kb, kx = jax.random.split(key, 3)

    n, cin, hw, cout = 2, 4, 16, 64               # small shapes; Cout lane-padded to 128
    params = {
        "w": jax.random.normal(kw, (cout, cin, 3, 3), jnp.float32) / (cin * 9) ** 0.5,
        "b": 0.01 * jax.random.normal(kb, (cout,), jnp.float32),
        "gamma": jnp.ones((cout,), jnp.float32),  # fresh nn.BatchNorm2d parameters
        "beta": jnp.zeros((cout,), jnp.float32),
    }
    x = jax.random.normal(kx, (n, cin, hw, hw), jnp.float32)

    # enable_bn=True path: Conv -> BN(batch stats) -> ReLU
    fwd_bn = jax.jit(functools.partial(encoder_layer, enable_bn=True, padding=1))
    y = jax.block_until_ready(fwd_bn(params, x))
    assert y.shape == (n, cout, hw, hw), y.shape
    assert bool(jnp.all(jnp.isfinite(y))) and bool(jnp.all(y >= 0.0))
    y_ref = encoder_layer_ref(params, x, enable_bn=True, padding=1)
    assert float(jnp.max(jnp.abs(y - y_ref))) < 0.1   # bf16 GEMM inputs -> loose tolerance

    # enable_bn=False path: Conv -> ReLU (bias + ReLU fused into the conv kernel epilogue)
    fwd = jax.jit(functools.partial(encoder_layer, enable_bn=False, padding=1))
    y2 = jax.block_until_ready(fwd(params, x))
    assert y2.shape == (n, cout, hw, hw), y2.shape
    assert bool(jnp.all(jnp.isfinite(y2))) and bool(jnp.all(y2 >= 0.0))
    y2_ref = encoder_layer_ref(params, x, enable_bn=False, padding=1)
    assert float(jnp.max(jnp.abs(y2 - y2_ref))) < 0.1

    print("KERNEL_OK")
</pallas_src>

<mosaic_0001>
module attributes {stable_mosaic.version = 11 : i64} {
  func.func @_conv3x3_kernel(%arg0: i32, %arg1: i32, %arg2: memref<1x18x18x4xbf16, #tpu.memory_space<vmem>>, %arg3: memref<3x12x128xbf16, #tpu.memory_space<vmem>>, %arg4: memref<1x128xf32, #tpu.memory_space<vmem>>, %arg5: memref<1x16x16x128xbf16, #tpu.memory_space<vmem>>, %arg6: memref<1x1x128xf32, #tpu.memory_space<vmem>>, %arg7: memref<1x1x128xf32, #tpu.memory_space<vmem>>) attributes {dimension_semantics = [#tpu.dimension_semantics<parallel>, #tpu.dimension_semantics<parallel>], iteration_bounds = array<i64: 1, 2>, scalar_prefetch = 0 : i64, scratch_operands = 0 : i64, tpu.core_type = #tpu.core_type<tc>, window_params = [{transform_indices = @transform_0, window_bounds = array<i64: 1, 18, 18, 4>}, {transform_indices = @transform_1, window_bounds = array<i64: 3, 12, 128>}, {transform_indices = @transform_2, window_bounds = array<i64: 1, 128>}, {transform_indices = @transform_3, window_bounds = array<i64: 1, 16, 16, 128>}, {transform_indices = @transform_4, window_bounds = array<i64: 1, 1, 128>}, {transform_indices = @transform_5, window_bounds = array<i64: 1, 1, 128>}]} {
    %cst = arith.constant 0.000000e+00 : f32
    %0 = vector.broadcast %cst : f32 to vector<1x128xf32>
    %cst_0 = arith.constant 0.000000e+00 : f32
    %1 = vector.broadcast %cst_0 : f32 to vector<1x128xf32>
    %cst_1 = arith.constant 0.000000e+00 : f32
    %2 = vector.broadcast %cst_1 : f32 to vector<256x128xf32>
    %c0 = arith.constant 0 : index
    %c0_2 = arith.constant 0 : index
    %c0_3 = arith.constant 0 : index
    %c0_4 = arith.constant 0 : index
    %3 = vector.load %arg2[%c0, %c0_2, %c0_3, %c0_4] : memref<1x18x18x4xbf16, #tpu.memory_space<vmem>>, vector<1x16x16x4xbf16>
    %4 = vector.shape_cast %3 : vector<1x16x16x4xbf16> to vector<16x16x4xbf16>
    %c0_5 = arith.constant 0 : index
    %c0_6 = arith.constant 0 : index
    %c1 = arith.constant 1 : index
    %c0_7 = arith.constant 0 : index
    %5 = vector.load %arg2[%c0_5, %c0_6, %c1, %c0_7] : memref<1x18x18x4xbf16, #tpu.memory_space<vmem>>, vector<1x16x16x4xbf16>
    %6 = vector.shape_cast %5 : vector<1x16x16x4xbf16> to vector<16x16x4xbf16>
    %c0_8 = arith.constant 0 : index
    %c0_9 = arith.constant 0 : index
    %c2 = arith.constant 2 : index
    %c0_10 = arith.constant 0 : index
    %7 = vector.load %arg2[%c0_8, %c0_9, %c2, %c0_10] : memref<1x18x18x4xbf16, #tpu.memory_space<vmem>>, vector<1x16x16x4xbf16>
    %8 = vector.shape_cast %7 : vector<1x16x16x4xbf16> to vector<16x16x4xbf16>
    %9 = tpu.concatenate %4, %6, %8 in 2 : vector<16x16x4xbf16>, vector<16x16x4xbf16>, vector<16x16x4xbf16> -> vector<16x16x12xbf16>
    %10 = vector.shape_cast %9 : vector<16x16x12xbf16> to vector<256x12xbf16>
    %c0_11 = arith.constant 0 : index
    %c0_12 = arith.constant 0 : index
    %c0_13 = arith.constant 0 : index
    %11 = vector.load %arg3[%c0_11, %c0_12, %c0_13] : memref<3x12x128xbf16, #tpu.memory_space<vmem>>, vector<1x12x128xbf16>
    %12 = vector.shape_cast %11 : vector<1x12x128xbf16> to vector<12x128xbf16>
    %cst_14 = arith.constant dense<0.000000e+00> : vector<256x128xf32>
    %13 = tpu.matmul %10, %12, %cst_14 {dimension_numbers = #tpu.dot_dimension_numbers<[1], [0], [0], [1], [0, 0, 1, 1], [], []>} : vector<256x12xbf16>, vector<12x128xbf16>, vector<256x128xf32> -> vector<256x128xf32>
    %14 = arith.addf %2, %13 : vector<256x128xf32>
    %c0_15 = arith.constant 0 : index
    %c1_16 = arith.constant 1 : index
    %c0_17 = arith.constant 0 : index
    %c0_18 = arith.constant 0 : index
    %15 = vector.load %arg2[%c0_15, %c1_16, %c0_17, %c0_18] : memref<1x18x18x4xbf16, #tpu.memory_space<vmem>>, vector<1x16x16x4xbf16>
    %16 = vector.shape_cast %15 : vector<1x16x16x4xbf16> to vector<16x16x4xbf16>
    %c0_19 = arith.constant 0 : index
    %c1_20 = arith.constant 1 : index
    %c1_21 = arith.constant 1 : index
    %c0_22 = arith.constant 0 : index
    %17 = vector.load %arg2[%c0_19, %c1_20, %c1_21, %c0_22] : memref<1x18x18x4xbf16, #tpu.memory_space<vmem>>, vector<1x16x16x4xbf16>
    %18 = vector.shape_cast %17 : vector<1x16x16x4xbf16> to vector<16x16x4xbf16>
    %c0_23 = arith.constant 0 : index
    %c1_24 = arith.constant 1 : index
    %c2_25 = arith.constant 2 : index
    %c0_26 = arith.constant 0 : index
    %19 = vector.load %arg2[%c0_23, %c1_24, %c2_25, %c0_26] : memref<1x18x18x4xbf16, #tpu.memory_space<vmem>>, vector<1x16x16x4xbf16>
    %20 = vector.shape_cast %19 : vector<1x16x16x4xbf16> to vector<16x16x4xbf16>
    %21 = tpu.concatenate %16, %18, %20 in 2 : vector<16x16x4xbf16>, vector<16x16x4xbf16>, vector<16x16x4xbf16> -> vector<16x16x12xbf16>
    %22 = vector.shape_cast %21 : vector<16x16x12xbf16> to vector<256x12xbf16>
    %c1_27 = arith.constant 1 : index
    %c0_28 = arith.constant 0 : index
    %c0_29 = arith.constant 0 : index
    %23 = vector.load %arg3[%c1_27, %c0_28, %c0_29] : memref<3x12x128xbf16, #tpu.memory_space<vmem>>, vector<1x12x128xbf16>
    %24 = vector.shape_cast %23 : vector<1x12x128xbf16> to vector<12x128xbf16>
    %cst_30 = arith.constant dense<0.000000e+00> : vector<256x128xf32>
    %25 = tpu.matmul %22, %24, %cst_30 {dimension_numbers = #tpu.dot_dimension_numbers<[1], [0], [0], [1], [0, 0, 1, 1], [], []>} : vector<256x12xbf16>, vector<12x128xbf16>, vector<256x128xf32> -> vector<256x128xf32>
    %26 = arith.addf %14, %25 : vector<256x128xf32>
    %c0_31 = arith.constant 0 : index
    %c2_32 = arith.constant 2 : index
    %c0_33 = arith.constant 0 : index
    %c0_34 = arith.constant 0 : index
    %27 = vector.load %arg2[%c0_31, %c2_32, %c0_33, %c0_34] : memref<1x18x18x4xbf16, #tpu.memory_space<vmem>>, vector<1x16x16x4xbf16>
    %28 = vector.shape_cast %27 : vector<1x16x16x4xbf16> to vector<16x16x4xbf16>
    %c0_35 = arith.constant 0 : index
    %c2_36 = arith.constant 2 : index
    %c1_37 = arith.constant 1 : index
    %c0_38 = arith.constant 0 : index
    %29 = vector.load %arg2[%c0_35, %c2_36, %c1_37, %c0_38] : memref<1x18x18x4xbf16, #tpu.memory_space<vmem>>, vector<1x16x16x4xbf16>
    %30 = vector.shape_cast %29 : vector<1x16x16x4xbf16> to vector<16x16x4xbf16>
    %c0_39 = arith.constant 0 : index
    %c2_40 = arith.constant 2 : index
    %c2_41 = arith.constant 2 : index
    %c0_42 = arith.constant 0 : index
    %31 = vector.load %arg2[%c0_39, %c2_40, %c2_41, %c0_42] : memref<1x18x18x4xbf16, #tpu.memory_space<vmem>>, vector<1x16x16x4xbf16>
    %32 = vector.shape_cast %31 : vector<1x16x16x4xbf16> to vector<16x16x4xbf16>
    %33 = tpu.concatenate %28, %30, %32 in 2 : vector<16x16x4xbf16>, vector<16x16x4xbf16>, vector<16x16x4xbf16> -> vector<16x16x12xbf16>
    %34 = vector.shape_cast %33 : vector<16x16x12xbf16> to vector<256x12xbf16>
    %c2_43 = arith.constant 2 : index
    %c0_44 = arith.constant 0 : index
    %c0_45 = arith.constant 0 : index
    %35 = vector.load %arg3[%c2_43, %c0_44, %c0_45] : memref<3x12x128xbf16, #tpu.memory_space<vmem>>, vector<1x12x128xbf16>
    %36 = vector.shape_cast %35 : vector<1x12x128xbf16> to vector<12x128xbf16>
    %cst_46 = arith.constant dense<0.000000e+00> : vector<256x128xf32>
    %37 = tpu.matmul %34, %36, %cst_46 {dimension_numbers = #tpu.dot_dimension_numbers<[1], [0], [0], [1], [0, 0, 1, 1], [], []>} : vector<256x12xbf16>, vector<12x128xbf16>, vector<256x128xf32> -> vector<256x128xf32>
    %38 = arith.addf %26, %37 : vector<256x128xf32>
    %cst_47 = arith.constant dense<0.000000e+00> : vector<128xf32>
    %39 = vector.multi_reduction <add>, %38, %cst_47 [0] : vector<256x128xf32> to vector<128xf32>
    %40 = vector.shape_cast %39 : vector<128xf32> to vector<1x128xf32>
    %41 = arith.addf %0, %40 : vector<1x128xf32>
    %42 = arith.mulf %38, %38 : vector<256x128xf32>
    %cst_48 = arith.constant dense<0.000000e+00> : vector<128xf32>
    %43 = vector.multi_reduction <add>, %42, %cst_48 [0] : vector<256x128xf32> to vector<128xf32>
    %44 = vector.shape_cast %43 : vector<128xf32> to vector<1x128xf32>
    %45 = arith.addf %1, %44 : vector<1x128xf32>
    %46 = vector.shape_cast %38 : vector<256x128xf32> to vector<16x16x128xf32>
    %47 = arith.truncf %46 : vector<16x16x128xf32> to vector<16x16x128xbf16>
    %c0_49 = arith.constant 0 : index
    %c0_50 = arith.constant 0 : index
    %c0_51 = arith.constant 0 : index
    %c0_52 = arith.constant 0 : index
    %48 = vector.load %arg5[%c0_49, %c0_50, %c0_51, %c0_52] : memref<1x16x16x128xbf16, #tpu.memory_space<vmem>>, vector<1x16x16x128xbf16>
    %49 = vector.shape_cast %48 : vector<1x16x16x128xbf16> to vector<16x16x128xbf16>
    %50 = vector.shape_cast %47 : vector<16x16x128xbf16> to vector<1x16x16x128xbf16>
    tpu.vector_store %arg5[%c0_49, %c0_50, %c0_51, %c0_52], %50 {strides = array<i32>} : memref<1x16x16x128xbf16, #tpu.memory_space<vmem>>, vector<1x16x16x128xbf16>,
    %51 = vector.shape_cast %41 : vector<1x128xf32> to vector<1x1x128xf32>
    %c0_53 = arith.constant 0 : index
    %c0_54 = arith.constant 0 : index
    %c0_55 = arith.constant 0 : index
    %52 = vector.load %arg6[%c0_53, %c0_54, %c0_55] : memref<1x1x128xf32, #tpu.memory_space<vmem>>, vector<1x1x128xf32>
    tpu.vector_store %arg6[%c0_53, %c0_54, %c0_55], %51 {strides = array<i32>} : memref<1x1x128xf32, #tpu.memory_space<vmem>>, vector<1x1x128xf32>,
    %53 = vector.shape_cast %45 : vector<1x128xf32> to vector<1x1x128xf32>
    %c0_56 = arith.constant 0 : index
    %c0_57 = arith.constant 0 : index
    %c0_58 = arith.constant 0 : index
    %54 = vector.load %arg7[%c0_56, %c0_57, %c0_58] : memref<1x1x128xf32, #tpu.memory_space<vmem>>, vector<1x1x128xf32>
    tpu.vector_store %arg7[%c0_56, %c0_57, %c0_58], %53 {strides = array<i32>} : memref<1x1x128xf32, #tpu.memory_space<vmem>>, vector<1x1x128xf32>,
    return
  }
  func.func @transform_0(%arg0: i32, %arg1: i32) -> (i32, i32, i32, i32) {
    %c0_i32 = arith.constant 0 : i32
    %c0_i32_0 = arith.constant 0 : i32
    %c0_i32_1 = arith.constant 0 : i32
    %c0_i32_2 = arith.constant 0 : i32
    return %arg1, %c0_i32, %c0_i32_0, %c0_i32_1 : i32, i32, i32, i32
  }
  func.func @transform_1(%arg0: i32, %arg1: i32) -> (i32, i32, i32) {
    %c0_i32 = arith.constant 0 : i32
    %c0_i32_0 = arith.constant 0 : i32
    %c0_i32_1 = arith.constant 0 : i32
    return %c0_i32, %c0_i32_0, %arg0 : i32, i32, i32
  }
  func.func @transform_2(%arg0: i32, %arg1: i32) -> (i32, i32) {
    %c0_i32 = arith.constant 0 : i32
    %c0_i32_0 = arith.constant 0 : i32
    return %c0_i32, %arg0 : i32, i32
  }
  func.func @transform_3(%arg0: i32, %arg1: i32) -> (i32, i32, i32, i32) {
    %c0_i32 = arith.constant 0 : i32
    %c0_i32_0 = arith.constant 0 : i32
    %c0_i32_1 = arith.constant 0 : i32
    return %arg1, %c0_i32, %c0_i32_0, %arg0 : i32, i32, i32, i32
  }
  func.func @transform_4(%arg0: i32, %arg1: i32) -> (i32, i32, i32) {
    %c0_i32 = arith.constant 0 : i32
    %c0_i32_0 = arith.constant 0 : i32
    return %arg1, %c0_i32, %arg0 : i32, i32, i32
  }
  func.func @transform_5(%arg0: i32, %arg1: i32) -> (i32, i32, i32) {
    %c0_i32 = arith.constant 0 : i32
    %c0_i32_0 = arith.constant 0 : i32
    return %arg1, %c0_i32, %arg0 : i32, i32, i32
  }
}

module attributes {stable_mosaic.version = 11 : i64} {
  func.func @_scale_shift_relu_kernel(%arg0: i32, %arg1: memref<512x128xbf16, #tpu.memory_space<vmem>>, %arg2: memref<1x128xf32, #tpu.memory_space<vmem>>, %arg3: memref<1x128xf32, #tpu.memory_space<vmem>>, %arg4: memref<512x128xf32, #tpu.memory_space<vmem>>) attributes {dimension_semantics = [#tpu.dimension_semantics<parallel>], iteration_bounds = array<i64: 1>, scalar_prefetch = 0 : i64, scratch_operands = 0 : i64, tpu.core_type = #tpu.core_type<tc>, window_params = [{transform_indices = @transform_0, window_bounds = array<i64: 512, 128>}, {pipeline_mode = #tpu.pipeline_mode<synchronous>, transform_indices = @transform_1, window_bounds = array<i64: 1, 128>}, {pipeline_mode = #tpu.pipeline_mode<synchronous>, transform_indices = @transform_2, window_bounds = array<i64: 1, 128>}, {transform_indices = @transform_3, window_bounds = array<i64: 512, 128>}]} {
    %c0 = arith.constant 0 : index
    %c0_0 = arith.constant 0 : index
    %0 = vector.load %arg1[%c0, %c0_0] : memref<512x128xbf16, #tpu.memory_space<vmem>>, vector<512x128xbf16>
    %1 = arith.extf %0 : vector<512x128xbf16> to vector<512x128xf32>
    %c0_1 = arith.constant 0 : index
    %c0_2 = arith.constant 0 : index
    %2 = vector.load %arg2[%c0_1, %c0_2] : memref<1x128xf32, #tpu.memory_space<vmem>>, vector<1x128xf32>
    %3 = vector.broadcast %2 : vector<1x128xf32> to vector<512x128xf32>
    %4 = arith.mulf %1, %3 : vector<512x128xf32>
    %c0_3 = arith.constant 0 : index
    %c0_4 = arith.constant 0 : index
    %5 = vector.load %arg3[%c0_3, %c0_4] : memref<1x128xf32, #tpu.memory_space<vmem>>, vector<1x128xf32>
    %6 = vector.broadcast %5 : vector<1x128xf32> to vector<512x128xf32>
    %7 = arith.addf %4, %6 : vector<512x128xf32>
    %cst = arith.constant 0.000000e+00 : f32
    %8 = vector.broadcast %cst : f32 to vector<512x128xf32>
    %9 = arith.maximumf %7, %8 : vector<512x128xf32>
    %c0_5 = arith.constant 0 : index
    %c0_6 = arith.constant 0 : index
    %10 = vector.load %arg4[%c0_5, %c0_6] : memref<512x128xf32, #tpu.memory_space<vmem>>, vector<512x128xf32>
    tpu.vector_store %arg4[%c0_5, %c0_6], %9 {strides = array<i32>} : memref<512x128xf32, #tpu.memory_space<vmem>>, vector<512x128xf32>,
    return
  }
  func.func @transform_0(%arg0: i32) -> (i32, i32) {
    %c0_i32 = arith.constant 0 : i32
    %c0_i32_0 = arith.constant 0 : i32
    return %arg0, %c0_i32 : i32, i32
  }
  func.func @transform_1(%arg0: i32) -> (i32, i32) {
    %c0_i32 = arith.constant 0 : i32
    %c0_i32_0 = arith.constant 0 : i32
    %c0_i32_1 = arith.constant 0 : i32
    return %c0_i32, %c0_i32_0 : i32, i32
  }
  func.func @transform_2(%arg0: i32) -> (i32, i32) {
    %c0_i32 = arith.constant 0 : i32
    %c0_i32_0 = arith.constant 0 : i32
    %c0_i32_1 = arith.constant 0 : i32
    return %c0_i32, %c0_i32_0 : i32, i32
  }
  func.func @transform_3(%arg0: i32) -> (i32, i32) {
    %c0_i32 = arith.constant 0 : i32
    %c0_i32_0 = arith.constant 0 : i32
    return %arg0, %c0_i32 : i32, i32
  }
}

</mosaic_0001>

<bundles_post_ra>
// kernel: encoder_layer.3
= control target key start
LH: loop header
LB: loop body
LE: loop exit
PB: predicated region body
PF: predicated region fallthrough
CT: control target
= control target key end

     0   :  { %s1023_s0 = inlined_call_operand.vmem [shape: bf16[512,128], index: 0, kind: input, shape index: {}]   ;;  %s1024_s1 = inlined_call_operand.vmem [shape: f32[1,128], index: 1, kind: input, shape index: {}]   ;;  %s1025_s2 = inlined_call_operand.vmem [shape: f32[1,128], index: 2, kind: input, shape index: {}]   ;;  %s1026_s3 = inlined_call_operand.vmem [shape: f32[512,128], index: 3, kind: output, shape index: {}]  }
   0x1   :  { %v419_v0 = vld [vmem:[%s1023_s0] sm:$0xff]   ;;  %v546_v4 = vld [vmem:[%s1023_s0 + $0x8] sm:$0xff]   ;;  %v547_v5 = vld [vmem:[%s1023_s0 + $0x10] sm:$0xff]  }
   0x2   :  { %v603_v1 = vld [vmem:[%s1024_s1] ss:$0 sm:$0xff]  ;;  %v420_v2 = vunpack.c.l.bf16 %v419_v0  ;;  %v421_v3 = vunpack.c.h.bf16 %v419_v0  ;;  %v548_v6 = vld [vmem:[%s1023_s0 + $0x18] sm:$0xff]   ;;  %v424_v8 = vunpack.c.l.bf16 %v546_v4  ;;  %v425_v9 = vunpack.c.h.bf16 %v546_v4  ;;  %v550_v33 = vld [vmem:[%s1023_s0 + $0x28] sm:$0xff]  }
   0x3   :  { %v617_v7 = vld [vmem:[%s1025_s2] ss:$0 sm:$0xff]  ;;  %v428_v10 = vunpack.c.l.bf16 %v547_v5  ;;  %v429_v11 = vunpack.c.h.bf16 %v547_v5  ;;  %v432_v14 = vunpack.c.l.bf16 %v548_v6  ;;  %v433_v15 = vunpack.c.h.bf16 %v548_v6  ;;  %v551_v34 = vld [vmem:[%s1023_s0 + $0x30] sm:$0xff]   ;;  %v552_v39 = vld [vmem:[%s1023_s0 + $0x38] sm:$0xff]  }
   0x4   :  { %v149_v12 = vmul.f32 %v420_v2, %v603_v1  ;;  %v150_v13 = vmul.f32 %v421_v3, %v603_v1  ;;  %v151_v16 = vmul.f32 %v424_v8, %v603_v1  ;;  %v152_v17 = vmul.f32 %v425_v9, %v603_v1  ;;  %v549_v28 = vld [vmem:[%s1023_s0 + $0x20] sm:$0xff]   ;;  %v554_v6 = vld [vmem:[%s1023_s0 + $0x48] sm:$0xff]   ;;  %v555_v8 = vld [vmem:[%s1023_s0 + $0x50] sm:$0xff]  }
   0x5   :  { %v153_v18 = vmul.f32 %v428_v10, %v603_v1  ;;  %v154_v19 = vmul.f32 %v429_v11, %v603_v1  ;;  %v155_v22 = vmul.f32 %v432_v14, %v603_v1  ;;  %v156_v23 = vmul.f32 %v433_v15, %v603_v1  ;;  %v553_v0 = vld [vmem:[%s1023_s0 + $0x40] sm:$0xff]  }
   0x6   :  { %v220_v20 = vadd.f32 %v617_v7, %v149_v12  ;;  %v221_v21 = vadd.f32 %v617_v7, %v150_v13  ;;  %v222_v24 = vadd.f32 %v617_v7, %v151_v16  ;;  %v223_v25 = vadd.f32 %v617_v7, %v152_v17  ;;  %v556_v13 = vld [vmem:[%s1023_s0 + $0x58] sm:$0xff]  }
   0x7   :  { %v224_v26 = vadd.f32 %v617_v7, %v153_v18  ;;  %v225_v27 = vadd.f32 %v617_v7, %v154_v19  ;;  %v226_v31 = vadd.f32 %v617_v7, %v155_v22  ;;  %v227_v32 = vadd.f32 %v617_v7, %v156_v23 }
   0x8   :  { %v284_v29 = vmax.f32 %v220_v20, 0.0  ;;  %v285_v30 = vmax.f32 %v221_v21, 0.0  ;;  %v286_v35 = vmax.f32 %v222_v24, 0.0  ;;  %v287_v36 = vmax.f32 %v223_v25, 0.0 }
   0x9   :  { %v288_v37 = vmax.f32 %v224_v26, 0.0  ;;  %v289_v38 = vmax.f32 %v225_v27, 0.0  ;;  %v290_v40 = vmax.f32 %v226_v31, 0.0  ;;  %v291_v41 = vmax.f32 %v227_v32, 0.0 }
   0xa   :  { %348 = vst [vmem:[%s1026_s3] sm:$0xff] %v284_v29  ;;  %349 = vst [vmem:[%s1026_s3 + $0x8] sm:$0xff] %v285_v30  ;;  %v436_v42 = vunpack.c.l.bf16 %v549_v28  ;;  %v437_v43 = vunpack.c.h.bf16 %v549_v28  ;;  %v440_v44 = vunpack.c.l.bf16 %v550_v33  ;;  %v441_v45 = vunpack.c.h.bf16 %v550_v33 }
   0xb   :  { %350 = vst [vmem:[%s1026_s3 + $0x10] sm:$0xff] %v286_v35  ;;  %351 = vst [vmem:[%s1026_s3 + $0x18] sm:$0xff] %v287_v36  ;;  %v444_v46 = vunpack.c.l.bf16 %v551_v34  ;;  %v445_v47 = vunpack.c.h.bf16 %v551_v34  ;;  %v448_v50 = vunpack.c.l.bf16 %v552_v39  ;;  %v449_v51 = vunpack.c.h.bf16 %v552_v39 }
   0xc   :  { %352 = vst [vmem:[%s1026_s3 + $0x20] sm:$0xff] %v288_v37  ;;  %353 = vst [vmem:[%s1026_s3 + $0x28] sm:$0xff] %v289_v38  ;;  %v157_v48 = vmul.f32 %v436_v42, %v603_v1  ;;  %v158_v49 = vmul.f32 %v437_v43, %v603_v1  ;;  %v159_v52 = vmul.f32 %v440_v44, %v603_v1  ;;  %v452_v16 = vunpack.c.l.bf16 %v553_v0  ;;  %v557_v38 = vld [vmem:[%s1023_s0 + $0x60] sm:$0xff]   ;;  %v558_v43 = vld [vmem:[%s1023_s0 + $0x68] sm:$0xff]  }
   0xd   :  { %354 = vst [vmem:[%s1026_s3 + $0x30] sm:$0xff] %v290_v40  ;;  %355 = vst [vmem:[%s1026_s3 + $0x38] sm:$0xff] %v291_v41  ;;  %v160_v53 = vmul.f32 %v441_v45, %v603_v1  ;;  %v161_v54 = vmul.f32 %v444_v46, %v603_v1  ;;  %v162_v55 = vmul.f32 %v445_v47, %v603_v1  ;;  %v453_v17 = vunpack.c.h.bf16 %v553_v0  ;;  %v559_v44 = vld [vmem:[%s1023_s0 + $0x70] sm:$0xff]  }
   0xe   :  { %v228_v56 = vadd.f32 %v617_v7, %v157_v48  ;;  %v229_v57 = vadd.f32 %v617_v7, %v158_v49  ;;  %v163_v58 = vmul.f32 %v448_v50, %v603_v1  ;;  %v164_v59 = vmul.f32 %v449_v51, %v603_v1  ;;  %v560_v49 = vld [vmem:[%s1023_s0 + $0x78] sm:$0xff]  }
   0xf   :  { %v230_v60 = vadd.f32 %v617_v7, %v159_v52  ;;  %v231_v61 = vadd.f32 %v617_v7, %v160_v53  ;;  %v232_v62 = vadd.f32 %v617_v7, %v161_v54  ;;  %v233_v63 = vadd.f32 %v617_v7, %v162_v55 }
  0x10   :  { %v292_v2 = vmax.f32 %v228_v56, 0.0  ;;  %v293_v3 = vmax.f32 %v229_v57, 0.0  ;;  %v234_v4 = vadd.f32 %v617_v7, %v163_v58  ;;  %v235_v5 = vadd.f32 %v617_v7, %v164_v59 }
  0x11   :  { %v294_v9 = vmax.f32 %v230_v60, 0.0  ;;  %v295_v10 = vmax.f32 %v231_v61, 0.0  ;;  %v296_v11 = vmax.f32 %v232_v62, 0.0  ;;  %v297_v12 = vmax.f32 %v233_v63, 0.0 }
  0x12   :  { %356 = vst [vmem:[%s1026_s3 + $0x40] sm:$0xff] %v292_v2  ;;  %357 = vst [vmem:[%s1026_s3 + $0x48] sm:$0xff] %v293_v3  ;;  %v298_v14 = vmax.f32 %v234_v4, 0.0  ;;  %v299_v15 = vmax.f32 %v235_v5, 0.0  ;;  %v456_v18 = vunpack.c.l.bf16 %v554_v6  ;;  %v457_v19 = vunpack.c.h.bf16 %v554_v6 }
  0x13   :  { %358 = vst [vmem:[%s1026_s3 + $0x50] sm:$0xff] %v294_v9  ;;  %359 = vst [vmem:[%s1026_s3 + $0x58] sm:$0xff] %v295_v10  ;;  %v460_v20 = vunpack.c.l.bf16 %v555_v8  ;;  %v461_v21 = vunpack.c.h.bf16 %v555_v8  ;;  %v165_v22 = vmul.f32 %v452_v16, %v603_v1  ;;  %v166_v23 = vmul.f32 %v453_v17, %v603_v1  ;;  %v562_v17 = vld [vmem:[%s1023_s0 + $0x88] sm:$0xff]  }
  0x14   :  { %360 = vst [vmem:[%s1026_s3 + $0x60] sm:$0xff] %v296_v11  ;;  %361 = vst [vmem:[%s1026_s3 + $0x68] sm:$0xff] %v297_v12  ;;  %v464_v24 = vunpack.c.l.bf16 %v556_v13  ;;  %v465_v25 = vunpack.c.h.bf16 %v556_v13  ;;  %v167_v26 = vmul.f32 %v456_v18, %v603_v1  ;;  %v168_v27 = vmul.f32 %v457_v19, %v603_v1  ;;  %v561_v12 = vld [vmem:[%s1023_s0 + $0x80] sm:$0xff]   ;;  %v563_v18 = vld [vmem:[%s1023_s0 + $0x90] sm:$0xff]  }
  0x15   :  { %362 = vst [vmem:[%s1026_s3 + $0x70] sm:$0xff] %v298_v14  ;;  %363 = vst [vmem:[%s1026_s3 + $0x78] sm:$0xff] %v299_v15  ;;  %v169_v28 = vmul.f32 %v460_v20, %v603_v1  ;;  %v170_v29 = vmul.f32 %v461_v21, %v603_v1  ;;  %v236_v30 = vadd.f32 %v617_v7, %v165_v22  ;;  %v468_v52 = vunpack.c.l.bf16 %v557_v38 }
  0x16   :  { %v237_v31 = vadd.f32 %v617_v7, %v166_v23  ;;  %v171_v32 = vmul.f32 %v464_v24, %v603_v1  ;;  %v172_v33 = vmul.f32 %v465_v25, %v603_v1  ;;  %v238_v34 = vadd.f32 %v617_v7, %v167_v26  ;;  %v564_v23 = vld [vmem:[%s1023_s0 + $0x98] sm:$0xff]  }
  0x17   :  { %v239_v35 = vadd.f32 %v617_v7, %v168_v27  ;;  %v240_v36 = vadd.f32 %v617_v7, %v169_v28  ;;  %v241_v37 = vadd.f32 %v617_v7, %v170_v29  ;;  %v300_v39 = vmax.f32 %v236_v30, 0.0 }
  0x18   :  { %v301_v40 = vmax.f32 %v237_v31, 0.0  ;;  %v242_v41 = vadd.f32 %v617_v7, %v171_v32  ;;  %v243_v42 = vadd.f32 %v617_v7, %v172_v33  ;;  %v302_v45 = vmax.f32 %v238_v34, 0.0 }
  0x19   :  { %v303_v46 = vmax.f32 %v239_v35, 0.0  ;;  %v304_v47 = vmax.f32 %v240_v36, 0.0  ;;  %v305_v48 = vmax.f32 %v241_v37, 0.0  ;;  %364 = vst [vmem:[%s1026_s3 + $0x80] sm:$0xff] %v300_v39  ;;  %v469_v53 = vunpack.c.h.bf16 %v557_v38 }
  0x1a   :  { %365 = vst [vmem:[%s1026_s3 + $0x88] sm:$0xff] %v301_v40  ;;  %v306_v50 = vmax.f32 %v242_v41, 0.0  ;;  %v307_v51 = vmax.f32 %v243_v42, 0.0  ;;  %366 = vst [vmem:[%s1026_s3 + $0x90] sm:$0xff] %v302_v45  ;;  %v472_v54 = vunpack.c.l.bf16 %v558_v43  ;;  %v473_v55 = vunpack.c.h.bf16 %v558_v43 }
  0x1b   :  { %367 = vst [vmem:[%s1026_s3 + $0x98] sm:$0xff] %v303_v46  ;;  %368 = vst [vmem:[%s1026_s3 + $0xa0] sm:$0xff] %v304_v47  ;;  %v476_v56 = vunpack.c.l.bf16 %v559_v44  ;;  %v477_v57 = vunpack.c.h.bf16 %v559_v44  ;;  %v173_v58 = vmul.f32 %v468_v52, %v603_v1  ;;  %v174_v59 = vmul.f32 %v469_v53, %v603_v1  ;;  %v566_v53 = vld [vmem:[%s1023_s0 + $0xa8] sm:$0xff]  }
  0x1c   :  { %369 = vst [vmem:[%s1026_s3 + $0xa8] sm:$0xff] %v305_v48  ;;  %370 = vst [vmem:[%s1026_s3 + $0xb0] sm:$0xff] %v306_v50  ;;  %v480_v60 = vunpack.c.l.bf16 %v560_v49  ;;  %v481_v61 = vunpack.c.h.bf16 %v560_v49  ;;  %v175_v62 = vmul.f32 %v472_v54, %v603_v1  ;;  %v176_v63 = vmul.f32 %v473_v55, %v603_v1  ;;  %v565_v48 = vld [vmem:[%s1023_s0 + $0xa0] sm:$0xff]   ;;  %v567_v54 = vld [vmem:[%s1023_s0 + $0xb0] sm:$0xff]  }
  0x1d   :  { %371 = vst [vmem:[%s1026_s3 + $0xb8] sm:$0xff] %v307_v51  ;;  %v177_v0 = vmul.f32 %v476_v56, %v603_v1  ;;  %v178_v2 = vmul.f32 %v477_v57, %v603_v1  ;;  %v244_v3 = vadd.f32 %v617_v7, %v173_v58  ;;  %v245_v4 = vadd.f32 %v617_v7, %v174_v59  ;;  %v568_v59 = vld [vmem:[%s1023_s0 + $0xb8] sm:$0xff]  }
  0x1e   :  { %v179_v5 = vmul.f32 %v480_v60, %v603_v1  ;;  %v180_v6 = vmul.f32 %v481_v61, %v603_v1  ;;  %v246_v8 = vadd.f32 %v617_v7, %v175_v62  ;;  %v247_v9 = vadd.f32 %v617_v7, %v176_v63 }
  0x1f   :  { %v248_v10 = vadd.f32 %v617_v7, %v177_v0  ;;  %v249_v11 = vadd.f32 %v617_v7, %v178_v2  ;;  %v308_v13 = vmax.f32 %v244_v3, 0.0  ;;  %v309_v14 = vmax.f32 %v245_v4, 0.0 }
  0x20   :  { %v250_v15 = vadd.f32 %v617_v7, %v179_v5  ;;  %v251_v16 = vadd.f32 %v617_v7, %v180_v6  ;;  %v310_v19 = vmax.f32 %v246_v8, 0.0  ;;  %v311_v20 = vmax.f32 %v247_v9, 0.0 }
  0x21   :  { %v312_v21 = vmax.f32 %v248_v10, 0.0  ;;  %v313_v22 = vmax.f32 %v249_v11, 0.0  ;;  %372 = vst [vmem:[%s1026_s3 + $0xc0] sm:$0xff] %v308_v13  ;;  %373 = vst [vmem:[%s1026_s3 + $0xc8] sm:$0xff] %v309_v14  ;;  %v484_v26 = vunpack.c.l.bf16 %v561_v12  ;;  %v485_v27 = vunpack.c.h.bf16 %v561_v12 }
  0x22   :  { %v314_v24 = vmax.f32 %v250_v15, 0.0  ;;  %v315_v25 = vmax.f32 %v251_v16, 0.0  ;;  %374 = vst [vmem:[%s1026_s3 + $0xd0] sm:$0xff] %v310_v19  ;;  %375 = vst [vmem:[%s1026_s3 + $0xd8] sm:$0xff] %v311_v20  ;;  %v488_v28 = vunpack.c.l.bf16 %v562_v17  ;;  %v489_v29 = vunpack.c.h.bf16 %v562_v17 }
  0x23   :  { %376 = vst [vmem:[%s1026_s3 + $0xe0] sm:$0xff] %v312_v21  ;;  %377 = vst [vmem:[%s1026_s3 + $0xe8] sm:$0xff] %v313_v22  ;;  %v492_v30 = vunpack.c.l.bf16 %v563_v18  ;;  %v493_v31 = vunpack.c.h.bf16 %v563_v18  ;;  %v181_v32 = vmul.f32 %v484_v26, %v603_v1  ;;  %v182_v33 = vmul.f32 %v485_v27, %v603_v1  ;;  %v569_v22 = vld [vmem:[%s1023_s0 + $0xc0] sm:$0xff]   ;;  %v570_v27 = vld [vmem:[%s1023_s0 + $0xc8] sm:$0xff]  }
  0x24   :  { %378 = vst [vmem:[%s1026_s3 + $0xf0] sm:$0xff] %v314_v24  ;;  %379 = vst [vmem:[%s1026_s3 + $0xf8] sm:$0xff] %v315_v25  ;;  %v496_v34 = vunpack.c.l.bf16 %v564_v23  ;;  %v497_v35 = vunpack.c.h.bf16 %v564_v23  ;;  %v183_v36 = vmul.f32 %v488_v28, %v603_v1  ;;  %v184_v37 = vmul.f32 %v489_v29, %v603_v1  ;;  %v571_v28 = vld [vmem:[%s1023_s0 + $0xd0] sm:$0xff]  }
  0x25   :  { %v185_v38 = vmul.f32 %v492_v30, %v603_v1  ;;  %v186_v39 = vmul.f32 %v493_v31, %v603_v1  ;;  %v252_v40 = vadd.f32 %v617_v7, %v181_v32  ;;  %v253_v41 = vadd.f32 %v617_v7, %v182_v33  ;;  %v572_v33 = vld [vmem:[%s1023_s0 + $0xd8] sm:$0xff]  }
  0x26   :  { %v187_v42 = vmul.f32 %v496_v34, %v603_v1  ;;  %v188_v43 = vmul.f32 %v497_v35, %v603_v1  ;;  %v254_v44 = vadd.f32 %v617_v7, %v183_v36  ;;  %v255_v45 = vadd.f32 %v617_v7, %v184_v37 }
  0x27   :  { %v256_v46 = vadd.f32 %v617_v7, %v185_v38  ;;  %v257_v47 = vadd.f32 %v617_v7, %v186_v39  ;;  %v316_v49 = vmax.f32 %v252_v40, 0.0  ;;  %v317_v50 = vmax.f32 %v253_v41, 0.0 }
  0x28   :  { %v258_v51 = vadd.f32 %v617_v7, %v187_v42  ;;  %v259_v52 = vadd.f32 %v617_v7, %v188_v43  ;;  %v318_v55 = vmax.f32 %v254_v44, 0.0  ;;  %v319_v56 = vmax.f32 %v255_v45, 0.0 }
  0x29   :  { %v320_v57 = vmax.f32 %v256_v46, 0.0  ;;  %v321_v58 = vmax.f32 %v257_v47, 0.0  ;;  %380 = vst [vmem:[%s1026_s3 + $0x100] sm:$0xff] %v316_v49  ;;  %381 = vst [vmem:[%s1026_s3 + $0x108] sm:$0xff] %v317_v50  ;;  %v500_v62 = vunpack.c.l.bf16 %v565_v48  ;;  %v501_v63 = vunpack.c.h.bf16 %v565_v48 }
  0x2a   :  { %v322_v60 = vmax.f32 %v258_v51, 0.0  ;;  %v323_v61 = vmax.f32 %v259_v52, 0.0  ;;  %382 = vst [vmem:[%s1026_s3 + $0x110] sm:$0xff] %v318_v55  ;;  %383 = vst [vmem:[%s1026_s3 + $0x118] sm:$0xff] %v319_v56  ;;  %v504_v0 = vunpack.c.l.bf16 %v566_v53  ;;  %v505_v2 = vunpack.c.h.bf16 %v566_v53 }
  0x2b   :  { %384 = vst [vmem:[%s1026_s3 + $0x120] sm:$0xff] %v320_v57  ;;  %385 = vst [vmem:[%s1026_s3 + $0x128] sm:$0xff] %v321_v58  ;;  %v508_v3 = vunpack.c.l.bf16 %v567_v54  ;;  %v509_v4 = vunpack.c.h.bf16 %v567_v54  ;;  %v189_v5 = vmul.f32 %v500_v62, %v603_v1  ;;  %v190_v6 = vmul.f32 %v501_v63, %v603_v1  ;;  %v573_v58 = vld [vmem:[%s1023_s0 + $0xe0] sm:$0xff]   ;;  %v574_v63 = vld [vmem:[%s1023_s0 + $0xe8] sm:$0xff]  }
  0x2c   :  { %386 = vst [vmem:[%s1026_s3 + $0x130] sm:$0xff] %v322_v60  ;;  %387 = vst [vmem:[%s1026_s3 + $0x138] sm:$0xff] %v323_v61  ;;  %v512_v8 = vunpack.c.l.bf16 %v568_v59  ;;  %v513_v9 = vunpack.c.h.bf16 %v568_v59  ;;  %v191_v10 = vmul.f32 %v504_v0, %v603_v1  ;;  %v192_v11 = vmul.f32 %v505_v2, %v603_v1  ;;  %v575_v0 = vld [vmem:[%s1023_s0 + $0xf0] sm:$0xff]  }
  0x2d   :  { %v193_v12 = vmul.f32 %v508_v3, %v603_v1  ;;  %v194_v13 = vmul.f32 %v509_v4, %v603_v1  ;;  %v260_v14 = vadd.f32 %v617_v7, %v189_v5  ;;  %v261_v15 = vadd.f32 %v617_v7, %v190_v6  ;;  %v576_v6 = vld [vmem:[%s1023_s0 + $0xf8] sm:$0xff]  }
  0x2e   :  { %v195_v16 = vmul.f32 %v512_v8, %v603_v1  ;;  %v196_v17 = vmul.f32 %v513_v9, %v603_v1  ;;  %v262_v18 = vadd.f32 %v617_v7, %v191_v10  ;;  %v263_v19 = vadd.f32 %v617_v7, %v192_v11 }
  0x2f   :  { %v264_v20 = vadd.f32 %v617_v7, %v193_v12  ;;  %v265_v21 = vadd.f32 %v617_v7, %v194_v13  ;;  %v324_v23 = vmax.f32 %v260_v14, 0.0  ;;  %v325_v24 = vmax.f32 %v261_v15, 0.0 }
  0x30   :  { %v266_v25 = vadd.f32 %v617_v7, %v195_v16  ;;  %v267_v26 = vadd.f32 %v617_v7, %v196_v17  ;;  %v326_v29 = vmax.f32 %v262_v18, 0.0  ;;  %v327_v30 = vmax.f32 %v263_v19, 0.0 }
  0x31   :  { %v328_v31 = vmax.f32 %v264_v20, 0.0  ;;  %v329_v32 = vmax.f32 %v265_v21, 0.0  ;;  %388 = vst [vmem:[%s1026_s3 + $0x140] sm:$0xff] %v324_v23  ;;  %389 = vst [vmem:[%s1026_s3 + $0x148] sm:$0xff] %v325_v24  ;;  %v516_v36 = vunpack.c.l.bf16 %v569_v22  ;;  %v517_v37 = vunpack.c.h.bf16 %v569_v22 }
  0x32   :  { %v330_v34 = vmax.f32 %v266_v25, 0.0  ;;  %v331_v35 = vmax.f32 %v267_v26, 0.0  ;;  %390 = vst [vmem:[%s1026_s3 + $0x150] sm:$0xff] %v326_v29  ;;  %391 = vst [vmem:[%s1026_s3 + $0x158] sm:$0xff] %v327_v30  ;;  %v520_v38 = vunpack.c.l.bf16 %v570_v27  ;;  %v521_v39 = vunpack.c.h.bf16 %v570_v27 }
  0x33   :  { %392 = vst [vmem:[%s1026_s3 + $0x160] sm:$0xff] %v328_v31  ;;  %393 = vst [vmem:[%s1026_s3 + $0x168] sm:$0xff] %v329_v32  ;;  %v524_v40 = vunpack.c.l.bf16 %v571_v28  ;;  %v525_v41 = vunpack.c.h.bf16 %v571_v28  ;;  %v197_v42 = vmul.f32 %v516_v36, %v603_v1  ;;  %v198_v43 = vmul.f32 %v517_v37, %v603_v1 }
  0x34   :  { %394 = vst [vmem:[%s1026_s3 + $0x170] sm:$0xff] %v330_v34  ;;  %395 = vst [vmem:[%s1026_s3 + $0x178] sm:$0xff] %v331_v35  ;;  %v528_v44 = vunpack.c.l.bf16 %v572_v33  ;;  %v529_v45 = vunpack.c.h.bf16 %v572_v33  ;;  %v199_v46 = vmul.f32 %v520_v38, %v603_v1  ;;  %v200_v47 = vmul.f32 %v521_v39, %v603_v1 }
  0x35   :  { %v201_v48 = vmul.f32 %v524_v40, %v603_v1  ;;  %v202_v49 = vmul.f32 %v525_v41, %v603_v1  ;;  %v268_v50 = vadd.f32 %v617_v7, %v197_v42  ;;  %v269_v51 = vadd.f32 %v617_v7, %v198_v43 }
  0x36   :  { %v203_v52 = vmul.f32 %v528_v44, %v603_v1  ;;  %v204_v53 = vmul.f32 %v529_v45, %v603_v1  ;;  %v270_v54 = vadd.f32 %v617_v7, %v199_v46  ;;  %v271_v55 = vadd.f32 %v617_v7, %v200_v47 }
  0x37   :  { %v272_v56 = vadd.f32 %v617_v7, %v201_v48  ;;  %v273_v57 = vadd.f32 %v617_v7, %v202_v49  ;;  %v332_v59 = vmax.f32 %v268_v50, 0.0  ;;  %v333_v60 = vmax.f32 %v269_v51, 0.0 }
  0x38   :  { %v274_v61 = vadd.f32 %v617_v7, %v203_v52  ;;  %v275_v62 = vadd.f32 %v617_v7, %v204_v53  ;;  %v334_v2 = vmax.f32 %v270_v54, 0.0  ;;  %v335_v3 = vmax.f32 %v271_v55, 0.0 }
  0x39   :  { %v336_v4 = vmax.f32 %v272_v56, 0.0  ;;  %v337_v5 = vmax.f32 %v273_v57, 0.0  ;;  %396 = vst [vmem:[%s1026_s3 + $0x180] sm:$0xff] %v332_v59  ;;  %397 = vst [vmem:[%s1026_s3 + $0x188] sm:$0xff] %v333_v60  ;;  %v532_v10 = vunpack.c.l.bf16 %v573_v58  ;;  %v533_v11 = vunpack.c.h.bf16 %v573_v58 }
  0x3a   :  { %v338_v8 = vmax.f32 %v274_v61, 0.0  ;;  %v339_v9 = vmax.f32 %v275_v62, 0.0  ;;  %398 = vst [vmem:[%s1026_s3 + $0x190] sm:$0xff] %v334_v2  ;;  %399 = vst [vmem:[%s1026_s3 + $0x198] sm:$0xff] %v335_v3  ;;  %v536_v12 = vunpack.c.l.bf16 %v574_v63  ;;  %v537_v13 = vunpack.c.h.bf16 %v574_v63 }
  0x3b   :  { %400 = vst [vmem:[%s1026_s3 + $0x1a0] sm:$0xff] %v336_v4  ;;  %401 = vst [vmem:[%s1026_s3 + $0x1a8] sm:$0xff] %v337_v5  ;;  %v540_v14 = vunpack.c.l.bf16 %v575_v0  ;;  %v541_v15 = vunpack.c.h.bf16 %v575_v0  ;;  %v205_v16 = vmul.f32 %v532_v10, %v603_v1  ;;  %v206_v17 = vmul.f32 %v533_v11, %v603_v1 }
  0x3c   :  { %402 = vst [vmem:[%s1026_s3 + $0x1b0] sm:$0xff] %v338_v8  ;;  %403 = vst [vmem:[%s1026_s3 + $0x1b8] sm:$0xff] %v339_v9  ;;  %v544_v18 = vunpack.c.l.bf16 %v576_v6  ;;  %v545_v19 = vunpack.c.h.bf16 %v576_v6  ;;  %v207_v20 = vmul.f32 %v536_v12, %v603_v1  ;;  %v208_v21 = vmul.f32 %v537_v13, %v603_v1 }
  0x3d   :  { %v209_v22 = vmul.f32 %v540_v14, %v603_v1  ;;  %v210_v23 = vmul.f32 %v541_v15, %v603_v1  ;;  %v276_v24 = vadd.f32 %v617_v7, %v205_v16  ;;  %v277_v25 = vadd.f32 %v617_v7, %v206_v17 }
  0x3e   :  { %v211_v26 = vmul.f32 %v544_v18, %v603_v1  ;;  %v212_v27 = vmul.f32 %v545_v19, %v603_v1  ;;  %v278_v28 = vadd.f32 %v617_v7, %v207_v20  ;;  %v279_v29 = vadd.f32 %v617_v7, %v208_v21 }
  0x3f   :  { %v280_v30 = vadd.f32 %v617_v7, %v209_v22  ;;  %v281_v31 = vadd.f32 %v617_v7, %v210_v23  ;;  %v340_v32 = vmax.f32 %v276_v24, 0.0  ;;  %v341_v33 = vmax.f32 %v277_v25, 0.0 }
  0x40   :  { %v282_v34 = vadd.f32 %v617_v7, %v211_v26  ;;  %v283_v35 = vadd.f32 %v617_v7, %v212_v27  ;;  %v342_v36 = vmax.f32 %v278_v28, 0.0  ;;  %v343_v37 = vmax.f32 %v279_v29, 0.0 }
  0x41   :  { %v344_v38 = vmax.f32 %v280_v30, 0.0  ;;  %v345_v39 = vmax.f32 %v281_v31, 0.0  ;;  %404 = vst [vmem:[%s1026_s3 + $0x1c0] sm:$0xff] %v340_v32  ;;  %405 = vst [vmem:[%s1026_s3 + $0x1c8] sm:$0xff] %v341_v33 }
  0x42   :  { %v346_v1 = vmax.f32 %v282_v34, 0.0  ;;  %v347_v40 = vmax.f32 %v283_v35, 0.0  ;;  %406 = vst [vmem:[%s1026_s3 + $0x1d0] sm:$0xff] %v342_v36  ;;  %407 = vst [vmem:[%s1026_s3 + $0x1d8] sm:$0xff] %v343_v37 }
  0x43   :  { %408 = vst [vmem:[%s1026_s3 + $0x1e0] sm:$0xff] %v344_v38  ;;  %409 = vst [vmem:[%s1026_s3 + $0x1e8] sm:$0xff] %v345_v39 }
  0x44   :  { %410 = vst [vmem:[%s1026_s3 + $0x1f0] sm:$0xff] %v346_v1  ;;  %411 = vst [vmem:[%s1026_s3 + $0x1f8] sm:$0xff] %v347_v40 }

// kernel: encoder_layer.2
= control target key start
LH: loop header
LB: loop body
LE: loop exit
PB: predicated region body
PF: predicated region fallthrough
CT: control target
= control target key end

     0   :  { %s4118_s18 = smov 0   ;;  %s4120_s19 = smov 0   ;;  %s5375_s0 = inlined_call_operand.vmem [shape: bf16[2,18,18,4], index: 0, kind: input, shape index: {}]   ;;  %s5376_s1 = inlined_call_operand.vmem [shape: bf16[3,12,128], index: 1, kind: input, shape index: {}]   ;;  %s5377_s2 = inlined_call_operand.vmem [shape: f32[1,128], index: 2, kind: input, shape index: {}]   ;;  %s5378_s3 = inlined_call_operand.vmem [shape: bf16[2,16,16,128], index: 3, kind: output, shape index: {0}]   ;;  %s5379_s4 = inlined_call_operand.vmem [shape: f32[2,1,128], index: 4, kind: output, shape index: {1}]   ;;  %s5380_s5 = inlined_call_operand.vmem [shape: f32[2,1,128], index: 5, kind: output, shape index: {2}]  }
   0x1   :  { %s4122_s20 = smov 0  }
   0x2 LB: > { %s25_s2 = sadd.s32 1, %s4080_s19  ;;  %p3236_p0 = scmp.ge.s32.totalorder %s4084_s20, 1  ;;  %s4084_s20 = sphi %s4122_s20, %s16_s20   ;;  %s4080_s19 = sphi %s4120_s19, %s5403_s19   ;;  %s4076_s18 = sphi %s4118_s18, %s5402_s18  }
   0x3   : > { %p26_p1 = scmp.ge.s32.totalorder %s25_s2, 2  ;;  %p227_p2 = scmp.lt.s32.totalorder %s4084_s20, 3 }
   0x5   : > { %s5405_s2 = smov (%p26_p1, %s25_s2), 0  ;;  %p228_p3 = pnand %p3236_p0, %p227_p2 }
   0x7   : > { %231 = sbr.rel (%p228_p3) target bundleno = 553 (0x229), region = 32 }
   0xc   : > { %p277_p4 = scmp.lt.s32.totalorder %s4076_s18, 1  ;;  %vm775_vm0 = vcmask 1046528   ;;  %vm502_vm1 = vsmask.f32 7424  ;;  %s4086_s25 = smov 8   ;;  %vm1574_vm2 = vcmask 1045504  }
   0xd   : > { %s4087_s26 = smov 4   ;;  %vm856_vm3 = vcmask 31744   ;;  %vm889_vm4 = vcmask 64512   ;;  %vm1541_vm5 = vcmask 97280  }
   0xe   : > { %s5407_s18 = smov (!%p277_p4, %s4076_s18), 1 }
   0xf   : > { %s3888_s21 = smul.u32 216, %s5407_s18  ;;  %s3601_s8 = sshll.u32 %s5407_s18, 7 }
  0x10   : > { %s5306_s11 = scalar_lea.vmem %s5378_s3, %s3601_s8  ;;  %s302_s14 = scalar_lea.vmem %s5379_s4, %s5407_s18 }
  0x11   : > { %s4142_s24 = scalar_lea.vmem %s5375_s0, %s3888_s21  ;;  %s308_s17 = scalar_lea.vmem %s5380_s5, %s5407_s18 }
  0x12   : > { %v3307_v0 = vld [vmem:[%s4142_s24 + $0x7c] sm:$0xf]  ;;  %v3345_v1 = vld [vmem:[%s4142_s24 + $0x78] sm:$0xe]  ;;  %v3305_v5 = vld [vmem:[%s4142_s24 + $0x70] sm:$0xf] }
  0x13   : > { %v3915_v2 = vld [vmem:[%s4142_s24 + $0x80] ss:$0 sps:$4 sm:$0x11]   ;;  %v3393_v3 = vcombine.low %v3345_v1, %v3307_v0  ;;  %v3306_v4 = vld [vmem:[%s4142_s24 + $0x78] sm:$0xf] }
  0x14   : > { %v3344_v6 = vld [vmem:[%s4142_s24 + $0x6c] sm:$0xe]  ;;  %v1417_v8 = vrot.slane %v3915_v2, 1  ;;  %v3918_v9 = vld [vmem:[%s4142_s24 + $0x74] ss:$0 sps:$4 sm:$0x11]   ;;  %v4161_v24 = vcombine.low %v3306_v4, %v3307_v0 }
  0x15   : > { %v1416_v7 = vrot.slane %v3393_v3, 1  ;;  %v3392_v10 = vcombine.low %v3344_v6, %v3305_v5  ;;  %v1233_v11 = vshll.u32 %v3915_v2, 16  ;;  %v3304_v12 = vld [vmem:[%s4142_s24 + $0x6c] sm:$0xf]  ;;  %v3291_v13 = vld [vmem:[%s4142_s24 + $0x1c] sm:$0xf] }
  0x16   : > { %v1414_v16 = vrot.slane %v3918_v9, 1  ;;  %v4154_v17 = vcombine.low %v3304_v12, %v3305_v5  ;;  %v3337_v18 = vld [vmem:[%s4142_s24 + $0x18] sm:$0xe]  ;;  %v3921_v20 = vld [vmem:[%s4142_s24 + $0x20] ss:$0 sps:$4 sm:$0x11]  }
  0x17   : > { %v1418_v14 = vsel %vm775_vm0, %v1416_v7, %v1417_v8  ;;  %v1413_v15 = vrot.slane %v3392_v10, 1  ;;  %v3290_v19 = vld [vmem:[%s4142_s24 + $0x18] sm:$0xf]  ;;  %v3385_v21 = vcombine.low %v3337_v18, %v3291_v13  ;;  %v3289_v22 = vld [vmem:[%s4142_s24 + $0x10] sm:$0xf]  ;;  %v1221_v23 = vshll.u32 %v3918_v9, 16 }
  0x18   : > { %1455 = vrot.lane.b32.xlu0 %v1418_v14, %s4086_s25  ;;  %v4164_v26 = vcombine.low %v3290_v19, %v3291_v13  ;;  %v3336_v27 = vld [vmem:[%s4142_s24 + $0xc] sm:$0xe]  ;;  %v1393_v30 = vrot.slane %v3921_v20, 1  ;;  %v3924_v31 = vld [vmem:[%s4142_s24 + $0x14] ss:$0 sps:$4 sm:$0x11]  }
  0x19   : > { %v1415_v25 = vsel %vm775_vm0, %v1413_v15, %v1414_v16  ;;  %v3288_v28 = vld [vmem:[%s4142_s24 + $0xc] sm:$0xf]  ;;  %v1392_v29 = vrot.slane %v3385_v21, 1  ;;  %v3384_v32 = vcombine.low %v3336_v27, %v3289_v22  ;;  %v1214_v34 = vshrl.u32 %v4154_v17, 16  ;;  %v3308_v38 = vld [vmem:[%s4142_s24 + $0x84] sm:$0xf] }
  0x1a   : > { %1453 = vrot.lane.b32.xlu1 %v1415_v25, %s4086_s25  ;;  %v4170_v33 = vcombine.low %v3288_v28, %v3289_v22  ;;  %v1216_v35 = vshll.u32 %v4154_v17, 16  ;;  %v1223_v36 = vrot.slane %v1221_v23, 1  ;;  %v1226_v37 = vshrl.u32 %v4161_v24, 16  ;;  %v4179_v43 = vld [vmem:[%s4142_s24 + $0x88] sm:$0xf] }
  0x1b   : > { %v1394_v39 = vsel %vm775_vm0, %v1392_v29, %v1393_v30  ;;  %v1389_v40 = vrot.slane %v3384_v32, 1  ;;  %v1390_v41 = vrot.slane %v3924_v31, 1  ;;  %v1125_v46 = vshll.u32 %v3924_v31, 16  ;;  %v4188_v52 = vld [vmem:[%s4142_s24 + $0x8c] ss:$0 sps:$4 sm:$0x11]  }
  0x1c   : > { %v1118_v42 = vshrl.u32 %v4170_v33, 16  ;;  %v1218_v44 = vrot.slane %v1216_v35, 1  ;;  %v1120_v45 = vshll.u32 %v4170_v33, 16  ;;  %v1228_v47 = vshll.u32 %v4161_v24, 16  ;;  %v3310_v57 = vld [vmem:[%s4142_s24 + $0x90] sm:$0xf] }
  0x1d   : > { %v1391_v48 = vsel %vm775_vm0, %v1389_v40, %v1390_v41  ;;  %v1235_v49 = vrot.slane %v1233_v11, 1  ;;  %v1130_v50 = vshrl.u32 %v4164_v26, 16  ;;  %v1132_v51 = vshll.u32 %v4164_v26, 16  ;;  %v3311_v62 = vld [vmem:[%s4142_s24 + $0x94] sm:$0xf] }
  0x1e   : > { %1439 = vrot.lane.b32.xlu1 %v1394_v39, %s4086_s25  ;;  %1437 = vrot.lane.b32.xlu0 %v1391_v48, %s4086_s25  ;;  %v1219_v53 = vor.u32 %v1218_v44, %v1214_v34  ;;  %v1122_v54 = vrot.slane %v1120_v45, 1  ;;  %v1127_v55 = vrot.slane %v1125_v46, 1  ;;  %v1230_v56 = vrot.slane %v1228_v47, 1  ;;  %v4201_v3 = vld [vmem:[%s4142_s24 + $0x98] ss:$0 sps:$4 sm:$0x11]  }
  0x1f   : > { %v1134_v58 = vrot.slane %v1132_v51, 1  ;;  %v1137_v59 = vshll.u32 %v3921_v20, 16  ;;  %v4193_v60 = vcombine.low %v3308_v38, %v4179_v43  ;;  %v1245_v61 = vshll.u32 %v4188_v52, 16  ;;  %v3346_v8 = vld [vmem:[%s4142_s24 + $0x84] sm:$0xe] }
  0x20   : > { %v1224_v63 = vsel %vm502_vm1, %v1219_v53, %v1223_v36  ;;  %v1123_v0 = vor.u32 %v1122_v54, %v1118_v42  ;;  %v1231_v1 = vor.u32 %v1230_v56, %v1226_v37  ;;  %v4198_v2 = vcombine.low %v3310_v57, %v3311_v62  ;;  %v3292_v12 = vld [vmem:[%s4142_s24 + $0x24] sm:$0xf]  ;;  %v4211_v13 = vld [vmem:[%s4142_s24 + $0x28] sm:$0xf]  ;;  %v3347_v23 = vld [vmem:[%s4142_s24 + $0x90] sm:$0xe] }
  0x21   : > { %v1135_v4 = vor.u32 %v1134_v58, %v1130_v50  ;;  %v1139_v5 = vrot.slane %v1137_v59, 1  ;;  %v1238_v6 = vshrl.u32 %v4193_v60, 16  ;;  %v1240_v7 = vshll.u32 %v4193_v60, 16  ;;  %v4223_v22 = vld [vmem:[%s4142_s24 + $0x2c] ss:$0 sps:$4 sm:$0x11]  }
  0x22   : > { %1325 = vrot.lane.b32.xlu0 %v1224_v63, %s4087_s26  ;;  %v1128_v9 = vsel %vm502_vm1, %v1123_v0, %v1127_v55  ;;  %v1236_v10 = vsel %vm502_vm1, %v1231_v1, %v1235_v49  ;;  %v1247_v11 = vrot.slane %v1245_v61, 1  ;;  %v1250_v15 = vshrl.u32 %v4198_v2, 16  ;;  %v3294_v30 = vld [vmem:[%s4142_s24 + $0x30] sm:$0xf]  ;;  %v3295_v31 = vld [vmem:[%s4142_s24 + $0x34] sm:$0xf] }
  0x23   : > { %1309 = vrot.lane.b32.xlu1 %v1128_v9, %s4087_s26  ;;  %v1242_v14 = vrot.slane %v1240_v7, 1  ;;  %v1252_v16 = vshll.u32 %v4198_v2, 16  ;;  %v1257_v18 = vshll.u32 %v4201_v3, 16  ;;  %v1140_v19 = vsel %vm502_vm1, %v1135_v4, %v1139_v5  ;;  %v4236_v41 = vld [vmem:[%s4142_s24 + $0x38] ss:$0 sps:$4 sm:$0x11]  }
  0x24   : > { %v3394_v20 = vcombine.low %v3346_v8, %v4179_v43  ;;  %v4220_v21 = vcombine.low %v3292_v12, %v4211_v13  ;;  %v3395_v29 = vcombine.low %v3347_v23, %v3311_v62  ;;  %v1420_v32 = vrot.slane %v4188_v52, 1  ;;  %v3338_v45 = vld [vmem:[%s4142_s24 + $0x24] sm:$0xe]  ;;  %v3339_v46 = vld [vmem:[%s4142_s24 + $0x30] sm:$0xe] }
  0x25   : > { %v1243_v25 = vor.u32 %v1242_v14, %v1238_v6  ;;  %v1254_v27 = vrot.slane %v1252_v16, 1  ;;  %v1259_v28 = vrot.slane %v1257_v18, 1  ;;  %v1149_v36 = vshll.u32 %v4223_v22, 16  ;;  %v3312_v50 = vld [vmem:[%s4142_s24 + $0x9c] sm:$0xf] }
  0x26   : > { %1327 = vrot.lane.b32.xlu0 %v1236_v10, %s4087_s26  ;;  %v1142_v34 = vshrl.u32 %v4220_v21, 16  ;;  %v1144_v35 = vshll.u32 %v4220_v21, 16  ;;  %v1419_v39 = vrot.slane %v3394_v20, 1  ;;  %v1422_v40 = vrot.slane %v3395_v29, 1  ;;  %v3313_v51 = vld [vmem:[%s4142_s24 + $0xa0] sm:$0xf] }
  0x27   : > { %1311 = vrot.lane.b32.xlu1 %v1140_v19, %s4087_s26  ;;  %v1248_v37 = vsel %vm502_vm1, %v1243_v25, %v1247_v11  ;;  %v1255_v38 = vor.u32 %v1254_v27, %v1250_v15  ;;  %v1151_v43 = vrot.slane %v1149_v36, 1  ;;  %v4238_v44 = vcombine.low %v3294_v30, %v3295_v31  ;;  %v4254_v58 = vld [vmem:[%s4142_s24 + $0xa4] ss:$0 sps:$4 sm:$0x11]   ;;  %v3314_v0 = vld [vmem:[%s4142_s24 + $0xa8] sm:$0xf] }
  0x28   : > { %v1146_v42 = vrot.slane %v1144_v35, 1  ;;  %v1423_v48 = vrot.slane %v4201_v3, 1  ;;  %v1161_v49 = vshll.u32 %v4236_v41, 16  ;;  %v1421_v55 = vsel %vm775_vm0, %v1419_v39, %v1420_v32  ;;  %v4261_v1 = vld [vmem:[%s4142_s24 + $0xac] sm:$0xf] }
  0x29   : > { %v1260_v47 = vsel %vm502_vm1, %v1255_v38, %v1259_v28  ;;  %v1154_v53 = vshrl.u32 %v4238_v44, 16  ;;  %v1156_v54 = vshll.u32 %v4238_v44, 16  ;;  %v3386_v57 = vcombine.low %v3338_v45, %v4211_v13  ;;  %v3348_v6 = vld [vmem:[%s4142_s24 + $0x9c] sm:$0xe]  ;;  %v3297_v23 = vld [vmem:[%s4142_s24 + $0x40] sm:$0xf] }
  0x2a   : > { %1329 = vrot.lane.b32.xlu0 %v1248_v37, %s4087_s26  ;;  %v1147_v52 = vor.u32 %v1146_v42, %v1142_v34  ;;  %v1163_v56 = vrot.slane %v1161_v49, 1  ;;  %v3387_v62 = vcombine.low %v3339_v46, %v3295_v31  ;;  %v4257_v63 = vcombine.low %v3312_v50, %v3313_v51  ;;  %v4274_v11 = vld [vmem:[%s4142_s24 + $0xb0] ss:$0 sps:$4 sm:$0x11]   ;;  %v3296_v16 = vld [vmem:[%s4142_s24 + $0x3c] sm:$0xf] }
  0x2b   : > { %1331 = vrot.lane.b32.xlu1 %v1260_v47, %s4087_s26  ;;  %v1158_v61 = vrot.slane %v1156_v54, 1  ;;  %v1424_v3 = vsel %vm775_vm0, %v1422_v40, %v1423_v48  ;;  %v1396_v4 = vrot.slane %v4223_v22, 1  ;;  %v4266_v5 = vcombine.low %v3314_v0, %v4261_v1  ;;  %v4288_v31 = vld [vmem:[%s4142_s24 + $0x44] ss:$0 sps:$4 sm:$0x11]  }
  0x2c   : > { %v1152_v59 = vsel %vm502_vm1, %v1147_v52, %v1151_v43  ;;  %v1262_v8 = vshrl.u32 %v4257_v63, 16  ;;  %v1264_v9 = vshll.u32 %v4257_v63, 16  ;;  %v1269_v10 = vshll.u32 %v4254_v58, 16  ;;  %v3349_v32 = vld [vmem:[%s4142_s24 + $0xa8] sm:$0xe] }
  0x2d   : > { %v1159_v7 = vor.u32 %v1158_v61, %v1154_v53  ;;  %v1395_v12 = vrot.slane %v3386_v57, 1  ;;  %v1399_v13 = vrot.slane %v4236_v41, 1  ;;  %v1274_v14 = vshrl.u32 %v4266_v5, 16  ;;  %v3298_v38 = vld [vmem:[%s4142_s24 + $0x48] sm:$0xf] }
  0x2e   : > { %1457 = vrot.lane.b32.xlu0 %v1421_v55, %s4086_s25  ;;  %v1276_v15 = vshll.u32 %v4266_v5, 16  ;;  %v1398_v19 = vrot.slane %v3387_v62, 1  ;;  %v1266_v20 = vrot.slane %v1264_v9, 1  ;;  %v1281_v22 = vshll.u32 %v4274_v11, 16  ;;  %v3299_v39 = vld [vmem:[%s4142_s24 + $0x4c] sm:$0xf] }
  0x2f   : > { %1313 = vrot.lane.b32.xlu1 %v1152_v59, %s4087_s26  ;;  %v1164_v18 = vsel %vm502_vm1, %v1159_v7, %v1163_v56  ;;  %v3396_v27 = vcombine.low %v3348_v6, %v3313_v51  ;;  %v4284_v28 = vcombine.low %v3296_v16, %v3297_v23  ;;  %v1271_v30 = vrot.slane %v1269_v10, 1  ;;  %v3340_v45 = vld [vmem:[%s4142_s24 + $0x3c] sm:$0xe]  ;;  %v4303_v48 = vld [vmem:[%s4142_s24 + $0x50] ss:$0 sps:$4 sm:$0x11]  }
  0x30   : > { %v1278_v25 = vrot.slane %v1276_v15, 1  ;;  %v1267_v29 = vor.u32 %v1266_v20, %v1262_v8  ;;  %v1397_v34 = vsel %vm775_vm0, %v1395_v12, %v1396_v4  ;;  %v1283_v36 = vrot.slane %v1281_v22, 1  ;;  %v3316_v57 = vld [vmem:[%s4142_s24 + $0xb4] sm:$0xf]  ;;  %v4315_v59 = vld [vmem:[%s4142_s24 + $0xb8] sm:$0xf] }
  0x31   : > { %v1168_v37 = vshll.u32 %v4284_v28, 16  ;;  %v1400_v40 = vsel %vm775_vm0, %v1398_v19, %v1399_v13  ;;  %v1166_v41 = vshrl.u32 %v4284_v28, 16  ;;  %v1173_v42 = vshll.u32 %v4288_v31, 16  ;;  %v4324_v4 = vld [vmem:[%s4142_s24 + $0xbc] ss:$0 sps:$4 sm:$0x11]  }
  0x32   : > { %1459 = vrot.lane.b32.xlu0 %v1424_v3, %s4086_s25  ;;  %v1279_v35 = vor.u32 %v1278_v25, %v1274_v14  ;;  %v4299_v43 = vcombine.low %v3298_v38, %v3299_v39  ;;  %v1425_v46 = vrot.slane %v3396_v27, 1  ;;  %v1272_v49 = vsel %vm502_vm1, %v1267_v29, %v1271_v30  ;;  %v3341_v3 = vld [vmem:[%s4142_s24 + $0x48] sm:$0xe]  ;;  %v4331_v9 = vld [vmem:[%s4142_s24 + $0xc4] sm:$0xf] }
  0x33   : > { %1315 = vrot.lane.b32.xlu1 %v1164_v18, %s4087_s26  ;;  %v1170_v47 = vrot.slane %v1168_v37, 1  ;;  %v1426_v50 = vrot.slane %v4254_v58, 1  ;;  %v3397_v51 = vcombine.low %v3349_v32, %v4261_v1  ;;  %v1175_v54 = vrot.slane %v1173_v42, 1  ;;  %v3318_v1 = vld [vmem:[%s4142_s24 + $0xc0] sm:$0xf] }
  0x34   : > { %v1180_v52 = vshll.u32 %v4299_v43, 16  ;;  %v1284_v53 = vsel %vm502_vm1, %v1279_v35, %v1283_v36  ;;  %v1178_v55 = vshrl.u32 %v4299_v43, 16  ;;  %v3388_v56 = vcombine.low %v3340_v45, %v3297_v23  ;;  %v4339_v15 = vld [vmem:[%s4142_s24 + $0xc8] ss:$0 sps:$4 sm:$0x11]  }
  0x35   : > { %v1171_v61 = vor.u32 %v1170_v47, %v1166_v41  ;;  %v1185_v58 = vshll.u32 %v4303_v48, 16  ;;  %v4319_v0 = vcombine.low %v3316_v57, %v4315_v59  ;;  %v1427_v6 = vsel %vm775_vm0, %v1425_v46, %v1426_v50  ;;  %v3300_v20 = vld [vmem:[%s4142_s24 + $0x54] sm:$0xf]  ;;  %v4344_v22 = vld [vmem:[%s4142_s24 + $0x58] sm:$0xf] }
  0x36   : > { %1441 = vrot.lane.b32.xlu0 %v1397_v34, %s4086_s25  ;;  %v1182_v62 = vrot.slane %v1180_v52, 1  ;;  %v1429_v7 = vrot.slane %v4274_v11, 1  ;;  %v1428_v10 = vrot.slane %v3397_v51, 1  ;;  %v1401_v12 = vrot.slane %v3388_v56, 1  ;;  %v3350_v34 = vld [vmem:[%s4142_s24 + $0xb4] sm:$0xe] }
  0x37   : > { %1443 = vrot.lane.b32.xlu1 %v1400_v40, %s4086_s25  ;;  %v1288_v8 = vshll.u32 %v4319_v0, 16  ;;  %v1402_v13 = vrot.slane %v4288_v31, 1  ;;  %v4336_v14 = vcombine.low %v3318_v1, %v4331_v9  ;;  %v1176_v16 = vsel %vm502_vm1, %v1171_v61, %v1175_v54  ;;  %v4360_v38 = vld [vmem:[%s4142_s24 + $0x5c] ss:$0 sps:$4 sm:$0x11]  }
  0x38   : > { %v1183_v18 = vor.u32 %v1182_v62, %v1178_v55  ;;  %v1187_v11 = vrot.slane %v1185_v58, 1  ;;  %v3389_v19 = vcombine.low %v3341_v3, %v3299_v39  ;;  %v1405_v23 = vrot.slane %v4303_v48, 1  ;;  %v3302_v39 = vld [vmem:[%s4142_s24 + $0x60] sm:$0xf]  ;;  %v3303_v45 = vld [vmem:[%s4142_s24 + $0x64] sm:$0xf] }
  0x39   : > { %v1286_v25 = vshrl.u32 %v4319_v0, 16  ;;  %v1293_v27 = vshll.u32 %v4324_v4, 16  ;;  %v1300_v29 = vshll.u32 %v4336_v14, 16  ;;  %v1290_v30 = vrot.slane %v1288_v8, 1  ;;  %v3351_v50 = vld [vmem:[%s4142_s24 + $0xc0] sm:$0xe] }
  0x3a   : > { %1333 = vrot.lane.b32.xlu0 %v1272_v49, %s4087_s26  ;;  %v1298_v31 = vshrl.u32 %v4336_v14, 16  ;;  %v1305_v32 = vshll.u32 %v4339_v15, 16  ;;  %v4355_v35 = vcombine.low %v3300_v20, %v4344_v22  ;;  %v1430_v36 = vsel %vm775_vm0, %v1428_v10, %v1429_v7  ;;  %v4373_v51 = vld [vmem:[%s4142_s24 + $0x68] ss:$0 sps:$4 sm:$0x11]  }
  0x3b   : > { %1335 = vrot.lane.b32.xlu1 %v1284_v53, %s4087_s26  ;;  %v1302_v37 = vrot.slane %v1300_v29, 1  ;;  %v1188_v40 = vsel %vm502_vm1, %v1183_v18, %v1187_v11  ;;  %v1404_v41 = vrot.slane %v3389_v19, 1  ;;  %v4366_v46 = vcombine.low %v3302_v39, %v3303_v45  ;;  %v312_v56 = vld [vmem:[%s4142_s24 + $0xc] sm:$0xf]  ;;  %v4379_v57 = vld [vmem:[%s4142_s24 + $0x10] sm:$0xf] }
  0x3c   : > { %v1192_v42 = vshll.u32 %v4355_v35, 16  ;;  %v1403_v47 = vsel %vm775_vm0, %v1401_v12, %v1402_v13  ;;  %v1295_v48 = vrot.slane %v1293_v27, 1  ;;  %v3398_v49 = vcombine.low %v3350_v34, %v4315_v59  ;;  %v310_v3 = vld [vmem:[%s4142_s24] sm:$0xf]  ;;  %v3342_v18 = vld [vmem:[%s4142_s24 + $0x54] sm:$0xe] }
  0x3d   : > { %v1291_v52 = vor.u32 %v1290_v30, %v1286_v25  ;;  %v1303_v53 = vor.u32 %v1302_v37, %v1298_v31  ;;  %v1307_v54 = vrot.slane %v1305_v32, 1  ;;  %v1197_v55 = vshll.u32 %v4360_v38, 16  ;;  %v3343_v11 = vld [vmem:[%s4142_s24 + $0x60] sm:$0xe] }
  0x3e   : > { %1461 = vrot.lane.b32.xlu0 %v1427_v6, %s4086_s25  ;;  %v1406_v61 = vsel %vm775_vm0, %v1404_v41, %v1405_v23  ;;  %v1190_v62 = vshrl.u32 %v4355_v35, 16  ;;  %v1194_v59 = vrot.slane %v1192_v42, 1  ;;  %v1204_v58 = vshll.u32 %v4366_v46, 16  ;;  %v4387_v6 = vld [vmem:[%s4142_s24 + $0x4] sm:$0xf] }
  0x3f   : > { %1317 = vrot.lane.b32.xlu1 %v1176_v16, %s4087_s26  ;;  %v3399_v1 = vcombine.low %v3351_v50, %v4331_v9  ;;  %v1432_v7 = vrot.slane %v4324_v4, 1  ;;  %v1209_v8 = vshll.u32 %v4373_v51, 16  ;;  %v4393_v10 = vcombine.low %v312_v56, %v4379_v57  ;;  %v4408_v32 = vld [vmem:[%s4142_s24 + $0x14] ss:$0 sps:$4 sm:$0x11]  }
  0x40   : > { %v1296_v12 = vsel %vm502_vm1, %v1291_v52, %v1295_v48  ;;  %v1308_v13 = vsel %vm502_vm1, %v1303_v53, %v1307_v54  ;;  %v1431_v9 = vrot.slane %v3398_v49, 1  ;;  %v1199_v16 = vrot.slane %v1197_v55, 1  ;;  %v4414_v37 = vld [vmem:[%s4142_s24 + $0x8] ss:$0 sps:$4 sm:$0x11]  }
  0x41   : > { %v1195_v19 = vor.u32 %v1194_v59, %v1190_v62  ;;  %v1202_v4 = vshrl.u32 %v4366_v46, 16  ;;  %v1206_v20 = vrot.slane %v1204_v58, 1  ;;  %v4402_v23 = vcombine.low %v310_v3, %v4387_v6  ;;  %v3438_v41 = vld [vmem:[%s4142_s24 + $0x24] sm:$0xf]  ;;  %v3436_v42 = vld [vmem:[%s4142_s24 + $0x18] sm:$0xf] }
  0x42   : > { %1463 = vrot.lane.b32.xlu0 %v1430_v36, %s4086_s25  ;;  %v1434_v25 = vrot.slane %v3399_v1, 1  ;;  %v1435_v27 = vrot.slane %v4339_v15, 1  ;;  %v1211_v29 = vrot.slane %v1209_v8, 1  ;;  %v3390_v30 = vcombine.low %v3342_v18, %v4344_v22  ;;  %v4420_v22 = vld [vmem:[%s4142_s24 + $0x28] sm:$0xf] }
  0x43   : > { %1319 = vrot.lane.b32.xlu1 %v1188_v40, %s4087_s26  ;;  %v3391_v31 = vcombine.low %v3343_v11, %v3303_v45  ;;  %v518_v34 = vshll.u32 %v4393_v10, 16  ;;  %v1433_v36 = vsel %vm775_vm0, %v1431_v9, %v1432_v7  ;;  %v506_v39 = vshll.u32 %v4402_v23, 16  ;;  %v4426_v48 = vld [vmem:[%s4142_s24 + $0x1c] sm:$0xf]  ;;  %v359_v56 = vld [vmem:[%s4142_s24 + $0xc] sm:$0xe] }
  0x44   : > { %v1200_v15 = vsel %vm502_vm1, %v1195_v19, %v1199_v16  ;;  %v1207_v40 = vor.u32 %v1206_v20, %v1202_v4  ;;  %v1436_v45 = vsel %vm775_vm0, %v1434_v25, %v1435_v27  ;;  %v1407_v49 = vrot.slane %v3390_v30, 1  ;;  %v4445_v3 = vld [vmem:[%s4142_s24 + $0x2c] ss:$0 sps:$4 sm:$0x11]   ;;  %v314_v4 = vld [vmem:[%s4142_s24 + $0x18] sm:$0xf] }
  0x45   : > { %v1410_v50 = vrot.slane %v3391_v31, 1  ;;  %v1411_v52 = vrot.slane %v4373_v51, 1  ;;  %v504_v53 = vshrl.u32 %v4402_v23, 16  ;;  %v508_v54 = vrot.slane %v506_v39, 1  ;;  %v4466_v30 = vld [vmem:[%s4142_s24 + $0x28] sm:$0xf] }
  0x46   : > { %1445 = vrot.lane.b32.xlu0 %v1403_v47, %s4086_s25  ;;  %v1408_v47 = vrot.slane %v4360_v38, 1  ;;  %v511_v55 = vshll.u32 %v4414_v37, 16  ;;  %v4436_v38 = vcombine.low %v3438_v41, %v4420_v22  ;;  %v4439_v62 = vcombine.low %v3436_v42, %v4426_v48  ;;  %v4453_v9 = vld [vmem:[%s4142_s24 + $0x20] ss:$0 sps:$4 sm:$0x11]  }
  0x47   : > { %1447 = vrot.lane.b32.xlu1 %v1406_v61, %s4086_s25  ;;  %v358_v61 = vld [vmem:[%s4142_s24] sm:$0xe]  ;;  %v1212_v59 = vsel %vm502_vm1, %v1207_v40, %v1211_v29  ;;  %v516_v51 = vshrl.u32 %v4393_v10, 16  ;;  %v520_v58 = vrot.slane %v518_v34, 1  ;;  %v523_v1 = vshll.u32 %v4408_v32, 16 }
  0x48   : > { %v1409_v7 = vsel %vm775_vm0, %v1407_v49, %v1408_v47  ;;  %v1412_v8 = vsel %vm775_vm0, %v1410_v50, %v1411_v52  ;;  %v509_v16 = vor.u32 %v508_v54, %v504_v53  ;;  %v513_v18 = vrot.slane %v511_v55, 1  ;;  %v316_v29 = vld [vmem:[%s4142_s24 + $0x24] sm:$0xf]  ;;  %v4485_v54 = vld [vmem:[%s4142_s24 + $0x20] ss:$0 sps:$4 sm:$0x11]  }
  0x49   : > { %v2148_v11 = vshll.u32 %v4436_v38, 16  ;;  %v2136_v19 = vshll.u32 %v4439_v62, 16  ;;  %v521_v20 = vor.u32 %v520_v58, %v516_v51  ;;  %v525_v25 = vrot.slane %v523_v1, 1  ;;  %v3485_v39 = vld [vmem:[%s4142_s24 + $0x24] sm:$0xe] }
  0x4a   : > { %1337 = vrot.lane.b32.xlu0 %v1296_v12, %s4087_s26  ;;  %v3273_v12 = vcombine.low %v359_v56, %v4379_v57  ;;  %v777_v27 = vrot.slane %v4414_v37, 1  ;;  %v2153_v57 = vshll.u32 %v4445_v3, 16  ;;  %v2146_v34 = vshrl.u32 %v4436_v38, 16  ;;  %v3440_v1 = vld [vmem:[%s4142_s24 + $0x30] sm:$0xf] }
  0x4b   : > { %1339 = vrot.lane.b32.xlu1 %v1308_v13, %s4087_s26  ;;  %v3272_v13 = vcombine.low %v358_v61, %v4387_v6  ;;  %v4462_v6 = vld [vmem:[%s4142_s24 + $0x1c] sm:$0xf]  ;;  %v514_v37 = vsel %vm502_vm1, %v509_v16, %v513_v18  ;;  %v2150_v40 = vrot.slane %v2148_v11, 1  ;;  %v2134_v41 = vshrl.u32 %v4439_v62, 16  ;;  %v4505_v11 = vld [vmem:[%s4142_s24 + $0x40] sm:$0xf] }
  0x4c   : > { %v2138_v42 = vrot.slane %v2136_v19, 1  ;;  %v526_v47 = vsel %vm502_vm1, %v521_v20, %v525_v25  ;;  %v779_v49 = vrot.slane %v3273_v12, 1  ;;  %v780_v50 = vrot.slane %v4408_v32, 1  ;;  %v3976_v12 = vld [vmem:[%s4142_s24 + $0x2c] ss:$0 sps:$4 sm:$0x11]  }
  0x4d   : > { %v776_v31 = vrot.slane %v3272_v13, 1  ;;  %v4482_v52 = vcombine.low %v316_v29, %v4466_v30  ;;  %v2155_v53 = vrot.slane %v2153_v57, 1  ;;  %v3533_v56 = vcombine.low %v3485_v39, %v4420_v22  ;;  %v3442_v18 = vld [vmem:[%s4142_s24 + $0x3c] sm:$0xf]  ;;  %v361_v20 = vld [vmem:[%s4142_s24 + $0x24] sm:$0xe] }
  0x4e   : > { %1465 = vrot.lane.b32.xlu0 %v1433_v36, %s4086_s25  ;;  %v2141_v36 = vshll.u32 %v4453_v9, 16  ;;  %v2151_v51 = vor.u32 %v2150_v40, %v2146_v34  ;;  %v2139_v58 = vor.u32 %v2138_v42, %v2134_v41  ;;  %v2409_v22 = vrot.slane %v4445_v3, 1  ;;  %v360_v25 = vld [vmem:[%s4142_s24 + $0x18] sm:$0xe] }
  0x4f   : > { %1321 = vrot.lane.b32.xlu1 %v1200_v15, %s4087_s26  ;;  %v4473_v15 = vcombine.low %v314_v4, %v4462_v6  ;;  %v778_v32 = vsel %vm775_vm0, %v776_v31, %v777_v27  ;;  %v2406_v13 = vrot.slane %v4453_v9, 1  ;;  %v535_v16 = vshll.u32 %v4485_v54, 16  ;;  %v4524_v42 = vld [vmem:[%s4142_s24 + $0x44] ss:$0 sps:$4 sm:$0x11]  }
  0x50   : > { %v2143_v55 = vrot.slane %v2141_v36, 1  ;;  %v2408_v19 = vrot.slane %v3533_v56, 1  ;;  %v2156_v9 = vsel %vm502_vm1, %v2151_v51, %v2155_v53  ;;  %v540_v31 = vshrl.u32 %v4482_v52, 16  ;;  %v318_v56 = vld [vmem:[%s4142_s24 + $0x30] sm:$0xf] }
  0x51   : > { %v528_v57 = vshrl.u32 %v4473_v15, 16  ;;  %v547_v36 = vshll.u32 %v3976_v12, 16  ;;  %v4519_v39 = vcombine.low %v3442_v18, %v4505_v11  ;;  %v3275_v40 = vcombine.low %v361_v20, %v4466_v30  ;;  %v4539_v30 = vld [vmem:[%s4142_s24 + $0x34] sm:$0xf] }
  0x52   : > { %1467 = vrot.lane.b32.xlu0 %v1436_v45, %s4086_s25  ;;  %v3484_v45 = vld [vmem:[%s4142_s24 + $0x18] sm:$0xe]  ;;  %v2144_v27 = vsel %vm502_vm1, %v2139_v58, %v2143_v55  ;;  %v3274_v41 = vcombine.low %v360_v25, %v4462_v6  ;;  %v4535_v55 = vld [vmem:[%s4142_s24 + $0x40] sm:$0xf]  ;;  %v2410_v6 = vsel %vm775_vm0, %v2408_v19, %v2409_v22  ;;  %v786_v58 = vrot.slane %v3976_v12, 1 }
  0x53   : > { %1323 = vrot.lane.b32.xlu1 %v1212_v59, %s4087_s26  ;;  %v3532_v61 = vcombine.low %v3484_v45, %v4426_v48  ;;  %v530_v59 = vshll.u32 %v4473_v15, 16  ;;  %v542_v48 = vshll.u32 %v4482_v52, 16  ;;  %v4528_v45 = vld [vmem:[%s4142_s24 + $0x38] ss:$0 sps:$4 sm:$0x11]   ;;  %v785_v51 = vrot.slane %v3275_v40, 1 }
  0x54   : > { %v2165_v19 = vshll.u32 %v4528_v45, 16  ;;  %v3486_v25 = vld [vmem:[%s4142_s24 + $0x30] sm:$0xe] }
  0x55   : > { %v2405_v4 = vrot.slane %v3532_v61, 1  ;;  %v532_v29 = vrot.slane %v530_v59, 1  ;;  %v544_v34 = vrot.slane %v542_v48, 1  ;;  %v549_v59 = vrot.slane %v547_v36, 1 }
  0x56   : > { %1449 = vrot.lane.b32.xlu0 %v1409_v7, %s4086_s25  ;;  %v4495_v7 = vld [vmem:[%s4142_s24 + $0x34] sm:$0xf]  ;;  %v2170_v48 = vshrl.u32 %v4519_v39, 16 }
  0x57   : > { %1451 = vrot.lane.b32.xlu1 %v1412_v8, %s4086_s25  ;;  %v781_v8 = vsel %vm775_vm0, %v779_v49, %v780_v50  ;;  %v4511_v3 = vcombine.low %v3440_v1, %v4495_v7  ;;  %v320_v49 = vld [vmem:[%s4142_s24 + $0x3c] sm:$0xf]  ;;  %v2407_v50 = vsel %vm775_vm0, %v2405_v4, %v2406_v13  ;;  %v533_v53 = vor.u32 %v532_v29, %v528_v57 }
  0x58   : > { %v545_v61 = vor.u32 %v544_v34, %v540_v31  ;;  %v782_v1 = vrot.slane %v3274_v41, 1  ;;  %v2177_v13 = vshll.u32 %v4524_v42, 16  ;;  %v4548_v22 = vcombine.low %v320_v49, %v4535_v55  ;;  %v4568_v34 = vld [vmem:[%s4142_s24 + $0x38] ss:$0 sps:$4 sm:$0x11]  }
  0x59   : > { %v2158_v18 = vshrl.u32 %v4511_v3, 16  ;;  %v787_v57 = vsel %vm775_vm0, %v785_v51, %v786_v58  ;;  %v2167_v41 = vrot.slane %v2165_v19, 1 }
  0x5a   : > { %695 = vrot.lane.b32.xlu0 %v514_v37, %s4087_s26  ;;  %v537_v37 = vrot.slane %v535_v16, 1  ;;  %v4551_v16 = vcombine.low %v318_v56, %v4539_v30  ;;  %v550_v4 = vsel %vm502_vm1, %v545_v61, %v549_v59  ;;  %v566_v31 = vshll.u32 %v4548_v22, 16  ;;  %v4578_v61 = vld [vmem:[%s4142_s24 + $0x4c] sm:$0xf]  ;;  %v3446_v59 = vld [vmem:[%s4142_s24 + $0x54] sm:$0xf] }
  0x5b   : > { %697 = vrot.lane.b32.xlu1 %v526_v47, %s4087_s26  ;;  %v2160_v47 = vshll.u32 %v4511_v3, 16 }
  0x5c   : > { %v538_v12 = vsel %vm502_vm1, %v533_v53, %v537_v37  ;;  %v554_v36 = vshll.u32 %v4551_v16, 16  ;;  %v2179_v37 = vrot.slane %v2177_v13, 1  ;;  %v564_v53 = vshrl.u32 %v4548_v22, 16 }
  0x5d   : > { %v568_v51 = vrot.slane %v566_v31, 1  ;;  %v552_v58 = vshrl.u32 %v4551_v16, 16  ;;  %v2412_v13 = vrot.slane %v4528_v45, 1 }
  0x5e   : > { %824 = vrot.lane.b32.xlu0 %v778_v32, %s4086_s25  ;;  %v2172_v32 = vshll.u32 %v4519_v39, 16 }
  0x5f   : > { %826 = vrot.lane.b32.xlu1 %v781_v8, %s4086_s25  ;;  %v783_v8 = vrot.slane %v4485_v54, 1  ;;  %v2162_v54 = vrot.slane %v2160_v47, 1  ;;  %v3534_v47 = vcombine.low %v3486_v25, %v4495_v7  ;;  %v556_v7 = vrot.slane %v554_v36, 1  ;;  %v4605_v36 = vld [vmem:[%s4142_s24 + $0x5c] ss:$0 sps:$4 sm:$0x11]  }
  0x60   : > { %v2174_v20 = vrot.slane %v2172_v32, 1  ;;  %v4582_v32 = vld [vmem:[%s4142_s24 + $0x58] sm:$0xf] }
  0x61   : > { %v784_v29 = vsel %vm775_vm0, %v782_v1, %v783_v8  ;;  %v2163_v40 = vor.u32 %v2162_v54, %v2158_v18  ;;  %v559_v1 = vshll.u32 %v4568_v34, 16 }
  0x62   : > { %2325 = vrot.lane.b32.xlu0 %v2144_v27, %s4087_s26  ;;  %v3487_v27 = vld [vmem:[%s4142_s24 + $0x3c] sm:$0xe]  ;;  %v2175_v49 = vor.u32 %v2174_v20, %v2170_v48  ;;  %v2411_v48 = vrot.slane %v3534_v47, 1  ;;  %v4598_v20 = vcombine.low %v3446_v59, %v4582_v32 }
  0x63   : > { %2327 = vrot.lane.b32.xlu1 %v2156_v9, %s4087_s26  ;;  %v4560_v9 = vld [vmem:[%s4142_s24 + $0x44] ss:$0 sps:$4 sm:$0x11]   ;;  %v2168_v8 = vsel %vm502_vm1, %v2163_v40, %v2167_v41  ;;  %v561_v31 = vrot.slane %v559_v1, 1  ;;  %v789_v41 = vrot.slane %v4568_v34, 1 }
  0x64   : > { %v571_v56 = vshll.u32 %v4560_v9, 16  ;;  %v2180_v54 = vsel %vm502_vm1, %v2175_v49, %v2179_v37  ;;  %5389 = vst [vmem:[#allocation3_spill] sm:$0xff] %v4598_v20  ;;  %v792_v45 = vrot.slane %v4560_v9, 1  ;;  %v4610_v37 = vld [vmem:[%s4142_s24 + $0x50] ss:$0 sps:$4 sm:$0x11]  }
  0x65   : > { %v2196_v47 = vshll.u32 %v4598_v20, 16  ;;  %v322_v49 = vld [vmem:[%s4142_s24 + $0x48] sm:$0xf]  ;;  %v3489_v34 = vld [vmem:[%s4142_s24 + $0x54] sm:$0xe]  ;;  %v2189_v1 = vshll.u32 %v4610_v37, 16 }
  0x66   : > { %2453 = vrot.lane.b32.xlu0 %v2407_v50, %s4086_s25  ;;  %v3535_v50 = vcombine.low %v3487_v27, %v4505_v11  ;;  %v363_v11 = vld [vmem:[%s4142_s24 + $0x3c] sm:$0xe]  ;;  %v573_v25 = vrot.slane %v571_v56, 1 }
  0x67   : > { %2455 = vrot.lane.b32.xlu1 %v2410_v6, %s4086_s25  ;;  %v3444_v6 = vld [vmem:[%s4142_s24 + $0x48] sm:$0xf]  ;;  %v3277_v27 = vcombine.low %v363_v11, %v4535_v55  ;;  %v2413_v55 = vsel %vm775_vm0, %v2411_v48, %v2412_v13  ;;  %v2194_v48 = vshrl.u32 %v4598_v20, 16  ;;  %v2198_v13 = vrot.slane %v2196_v47, 1 }
  0x68   : > { %v4593_v18 = vcombine.low %v3444_v6, %v4578_v61  ;;  %v2414_v19 = vrot.slane %v3535_v50, 1  ;;  %v324_v50 = vld [vmem:[%s4142_s24 + $0x54] sm:$0xf]  ;;  %v3488_v11 = vld [vmem:[%s4142_s24 + $0x48] sm:$0xe] }
  0x69   : > { %v791_v59 = vrot.slane %v3277_v27, 1  ;;  %v3537_v27 = vcombine.low %v3489_v34, %v4582_v32  ;;  %v2199_v47 = vor.u32 %v2198_v13, %v2194_v48 }
  0x6a   : > { %699 = vrot.lane.b32.xlu0 %v538_v12, %s4087_s26  ;;  %v362_v12 = vld [vmem:[%s4142_s24 + $0x30] sm:$0xe]  ;;  %5388 = vst [vmem:[#allocation2_spill] sm:$0xff] %v4593_v18  ;;  %v2184_v9 = vshll.u32 %v4593_v18, 16 }
  0x6b   : > { %701 = vrot.lane.b32.xlu1 %v550_v4, %s4087_s26  ;;  %v2415_v4 = vrot.slane %v4524_v42, 1  ;;  %v3276_v42 = vcombine.low %v362_v12, %v4539_v30  ;;  %v4618_v30 = vld [vmem:[%s4142_s24 + $0x4c] sm:$0xf]  ;;  %v2201_v12 = vshll.u32 %v4605_v36, 16 }
  0x6d   : > { %v2416_v40 = vsel %vm775_vm0, %v2414_v19, %v2415_v4  ;;  %v4011_v19 = vld [vmem:[%s5376_s1 + $0x8] sm:$0x3f]   ;;  %v4644_v4 = vld [vmem:[%s4142_s24 + $0x5c] ss:$0 sps:$4 sm:$0x11]  }
  0x6e   : > { %828 = vrot.lane.b32.xlu0 %v784_v29, %s4086_s25  ;;  %v557_v29 = vor.u32 %v556_v7, %v552_v58  ;;  %v2182_v58 = vshrl.u32 %v4593_v18, 16  ;;  %v2186_v7 = vrot.slane %v2184_v9, 1  ;;  %3884 = vmatprep.subr.msk.bf16.mxu0 %vm1574_vm2, %v4011_v19  ;;  %v2191_v9 = vrot.slane %v2189_v1, 1 }
  0x6f   : > { %830 = vrot.lane.b32.xlu1 %v787_v57, %s4086_s25  ;;  %v569_v57 = vor.u32 %v568_v51, %v564_v53  ;;  %v4622_v53 = vld [vmem:[%s4142_s24 + $0x58] sm:$0xf]  ;;  %v788_v51 = vrot.slane %v3276_v42, 1  ;;  %3885 = vmatprep.subr.msk.bf16.mxu1 %vm1574_vm2, %v4011_v19  ;;  %v798_v20 = vrot.slane %v4644_v4, 1 }
  0x70   : > { %v562_v6 = vsel %vm502_vm1, %v557_v29, %v561_v31  ;;  %v4651_v29 = vld [vmem:[%s4142_s24 + $0x64] sm:$0xf]  ;;  %v1576_v31 = vsel %vm1574_vm2, %v4011_v19, 0  ;;  %v364_v19 = vld [vmem:[%s4142_s24 + $0x48] sm:$0xe] }
  0x71   : > { %v574_v56 = vsel %vm502_vm1, %v569_v57, %v573_v25  ;;  %v3448_v25 = vld [vmem:[%s4142_s24 + $0x60] sm:$0xf]  ;;  %v3536_v57 = vcombine.low %v3488_v11, %v4578_v61  ;;  %v790_v42 = vsel %vm775_vm0, %v788_v51, %v789_v41  ;;  %v793_v61 = vsel %vm775_vm0, %v791_v59, %v792_v45  ;;  %3781 = vmatpush3.bf16.msra.mxu0 %v1576_v31  ;;  %v4668_v51 = vld [vmem:[%s4142_s24 + $0x70] sm:$0xf] }
  0x72   : > { %2329 = vrot.lane.b32.xlu0 %v2168_v8, %s4087_s26  ;;  %v4633_v8 = vcombine.low %v322_v49, %v4618_v30  ;;  %v2203_v49 = vrot.slane %v2201_v12, 1  ;;  %3883 = vmatpush3.bf16.msra.mxu1 %v1576_v31  ;;  %v2418_v41 = vrot.slane %v4610_v37, 1  ;;  %v4671_v34 = vcombine.low %v3448_v25, %v4651_v29  ;;  %v4691_v31 = vld [vmem:[%s4142_s24 + $0x68] ss:$0 sps:$4 sm:$0x11]  }
  0x73   : > { %2331 = vrot.lane.b32.xlu1 %v2180_v54, %s4087_s26  ;;  %v4638_v54 = vcombine.low %v324_v50, %v4622_v53  ;;  %v2420_v45 = vrot.slane %v3537_v27, 1  ;;  %v2417_v59 = vrot.slane %v3536_v57, 1  ;;  %v4687_v27 = vld [vmem:[%s4142_s24 + $0x74] ss:$0 sps:$4 sm:$0x11]  }
  0x74   : > { %5390 = vst [vmem:[#allocation4_spill] sm:$0xff] %v4633_v8  ;;  %v578_v32 = vshll.u32 %v4633_v8, 16  ;;  %5392 = vst [vmem:[#allocation6_spill] sm:$0xff] %v4671_v34  ;;  %v576_v1 = vshrl.u32 %v4633_v8, 16  ;;  %v2204_v13 = vsel %vm502_vm1, %v2199_v47, %v2203_v49  ;;  %v3278_v49 = vcombine.low %v364_v19, %v4618_v30  ;;  %v3491_v19 = vld [vmem:[%s4142_s24 + $0x6c] sm:$0xe] }
  0x75   : > { %5391 = vst [vmem:[#allocation5_spill] sm:$0xff] %v4638_v54  ;;  %v590_v50 = vshll.u32 %v4638_v54, 16  ;;  %v2225_v30 = vshll.u32 %v4687_v27, 16 }
  0x76   : > { %2457 = vrot.lane.b32.xlu0 %v2413_v55, %s4086_s25  ;;  %v2187_v55 = vor.u32 %v2186_v7, %v2182_v58  ;;  %v588_v58 = vshrl.u32 %v4638_v54, 16  ;;  %v595_v7 = vshll.u32 %v4644_v4, 16  ;;  %v580_v11 = vrot.slane %v578_v32, 1  ;;  %v326_v54 = vld [vmem:[%s4142_s24 + $0x60] sm:$0xf] }
  0x77   : > { %2459 = vrot.lane.b32.xlu1 %v2416_v40, %s4086_s25  ;;  %v4658_v40 = vld [vmem:[%s4142_s24 + $0x50] ss:$0 sps:$4 sm:$0x11]   ;;  %v592_v12 = vrot.slane %v590_v50, 1  ;;  %v2419_v32 = vsel %vm775_vm0, %v2417_v59, %v2418_v41  ;;  %v3490_v41 = vld [vmem:[%s4142_s24 + $0x60] sm:$0xe] }
  0x78   : > { %v2192_v37 = vsel %vm502_vm1, %v2187_v55, %v2191_v9  ;;  %v583_v48 = vshll.u32 %v4658_v40, 16  ;;  %v328_v55 = vld [vmem:[%s4142_s24 + $0x6c] sm:$0xf]  ;;  %v4697_v9 = vld [vmem:[%s4142_s24 + $0x70] sm:$0xf] }
  0x79   : > { %v593_v50 = vor.u32 %v592_v12, %v588_v58  ;;  %v4712_v59 = vcombine.low %v328_v55, %v4697_v9  ;;  %v2213_v58 = vshll.u32 %v4691_v31, 16  ;;  %v4726_v12 = vld [vmem:[%s4142_s24 + $0x74] ss:$0 sps:$4 sm:$0x11]  }
  0x7a   : > { %703 = vrot.lane.b32.xlu0 %v562_v6, %s4087_s26  ;;  %v3450_v6 = vld [vmem:[%s4142_s24 + $0x6c] sm:$0xf]  ;;  %v585_v47 = vrot.slane %v583_v48, 1  ;;  %v4732_v55 = vld [vmem:[%s4142_s24 + $0x68] ss:$0 sps:$4 sm:$0x11]  }
  0x7b   : > { %705 = vrot.lane.b32.xlu1 %v574_v56, %s4087_s26  ;;  %v2421_v56 = vrot.slane %v4605_v36, 1  ;;  %v365_v36 = vld [vmem:[%s4142_s24 + $0x54] sm:$0xe]  ;;  %v4684_v25 = vcombine.low %v3450_v6, %v4668_v51  ;;  %v597_v6 = vrot.slane %v595_v7, 1 }
  0x7c   : > { %v3279_v57 = vcombine.low %v365_v36, %v4622_v53 }
  0x7d   : > { %5393 = vst [vmem:[#allocation7_spill] sm:$0xff] %v4684_v25  ;;  %v2422_v53 = vsel %vm775_vm0, %v2420_v45, %v2421_v56  ;;  %v2220_v36 = vshll.u32 %v4684_v25, 16  ;;  %v2206_v56 = vshrl.u32 %v4671_v34, 16  ;;  %v2218_v7 = vshrl.u32 %v4684_v25, 16  ;;  %v4751_v25 = vld [vmem:[%s4142_s24 + $0x7c] sm:$0xf] }
  0x7e   : > { %832 = vrot.lane.b32.xlu0 %v790_v42, %s4086_s25  ;;  %v2208_v42 = vshll.u32 %v4671_v34, 16  ;;  %v797_v8 = vrot.slane %v3279_v57, 1  ;;  %v3538_v57 = vcombine.low %v3490_v41, %v4651_v29  ;;  %v3454_v41 = vld [vmem:[%s4142_s24 + $0x84] sm:$0xf] }
  0x7f   : > { %834 = vrot.lane.b32.xlu1 %v793_v61, %s4086_s25  ;;  %v581_v61 = vor.u32 %v580_v11, %v576_v1  ;;  %v598_v11 = vsel %vm502_vm1, %v593_v50, %v597_v6  ;;  %v2222_v48 = vrot.slane %v2220_v36, 1  ;;  %v2424_v6 = vrot.slane %v4691_v31, 1 }
  0x80   : > { %v2210_v45 = vrot.slane %v2208_v42, 1  ;;  %v614_v42 = vshll.u32 %v4712_v59, 16  ;;  %v2423_v34 = vrot.slane %v3538_v57, 1 }
  0x81   : > { %v586_v4 = vsel %vm502_vm1, %v581_v61, %v585_v47  ;;  %v2215_v47 = vrot.slane %v2213_v58, 1  ;;  %v3452_v58 = vld [vmem:[%s4142_s24 + $0x78] sm:$0xf] }
  0x82   : > { %2333 = vrot.lane.b32.xlu0 %v2192_v37, %s4087_s26  ;;  %v4706_v37 = vld [vmem:[%s4142_s24 + $0x64] sm:$0xf]  ;;  %v2211_v61 = vor.u32 %v2210_v45, %v2206_v56  ;;  %v2223_v56 = vor.u32 %v2222_v48, %v2218_v7  ;;  %v3539_v45 = vcombine.low %v3491_v19, %v4668_v51  ;;  %v616_v18 = vrot.slane %v614_v42, 1 }
  0x83   : > { %2335 = vrot.lane.b32.xlu1 %v2204_v13, %s4087_s26  ;;  %v795_v13 = vrot.slane %v4658_v40, 1  ;;  %v794_v40 = vrot.slane %v3278_v49, 1  ;;  %v4722_v1 = vcombine.low %v326_v54, %v4706_v37  ;;  %v2227_v54 = vrot.slane %v2225_v30, 1  ;;  %v367_v49 = vld [vmem:[%s4142_s24 + $0x6c] sm:$0xe] }
  0x84   : > { %v799_v30 = vsel %vm775_vm0, %v797_v8, %v798_v20  ;;  %v2216_v31 = vsel %vm502_vm1, %v2211_v61, %v2215_v47  ;;  %v3281_v20 = vcombine.low %v367_v49, %v4697_v9  ;;  %v4768_v57 = vcombine.low %v3452_v58, %v4751_v25  ;;  %v330_v58 = vld [vmem:[%s4142_s24 + $0x78] sm:$0xf] }
  0x85   : > { %v796_v50 = vsel %vm775_vm0, %v794_v40, %v795_v13  ;;  %v602_v36 = vshll.u32 %v4722_v1, 16  ;;  %v619_v13 = vshll.u32 %v4726_v12, 16  ;;  %v607_v40 = vshll.u32 %v4732_v55, 16 }
  0x86   : > { %2461 = vrot.lane.b32.xlu0 %v2419_v32, %s4086_s25  ;;  %v600_v7 = vshrl.u32 %v4722_v1, 16  ;;  %v2228_v61 = vsel %vm502_vm1, %v2223_v56, %v2227_v54  ;;  %v2426_v9 = vrot.slane %v3539_v45, 1  ;;  %v4781_v56 = vld [vmem:[%s4142_s24 + $0x8c] ss:$0 sps:$4 sm:$0x11]   ;;  %v2232_v45 = vshll.u32 %v4768_v57, 16 }
  0x87   : > { %2463 = vrot.lane.b32.xlu1 %v2422_v53, %s4086_s25  ;;  %v366_v53 = vld [vmem:[%s4142_s24 + $0x60] sm:$0xe]  ;;  %v604_v48 = vrot.slane %v602_v36, 1  ;;  %v621_v49 = vrot.slane %v619_v13, 1  ;;  %v609_v36 = vrot.slane %v607_v40, 1 }
  0x88   : > { %v3280_v8 = vcombine.low %v366_v53, %v4706_v37  ;;  %v2427_v37 = vrot.slane %v4687_v27, 1  ;;  %v804_v53 = vrot.slane %v4726_v12, 1  ;;  %v801_v27 = vrot.slane %v4732_v55, 1  ;;  %v3493_v55 = vld [vmem:[%s4142_s24 + $0x84] sm:$0xe] }
  0x8a   : > { %707 = vrot.lane.b32.xlu0 %v586_v4, %s4087_s26  ;;  %v4735_v32 = vpop.permute.xlu0 %1455  ;;  %v4745_v4 = vld [vmem:[%s4142_s24 + $0x88] sm:$0xf]  ;;  %v800_v54 = vrot.slane %v3280_v8, 1 }
  0x8b   : > { %709 = vrot.lane.b32.xlu1 %v598_v11, %s4087_s26  ;;  %v612_v11 = vshrl.u32 %v4712_v59, 16  ;;  %v4765_v19 = vcombine.low %v3454_v41, %v4745_v4  ;;  %v803_v41 = vrot.slane %v3281_v20, 1  ;;  %v332_v20 = vld [vmem:[%s4142_s24 + $0x84] sm:$0xf]  ;;  %v4796_v8 = vld [vmem:[%s4142_s24 + $0x88] sm:$0xf] }
  0x8c   : > { %v1454_v29 = vpop.permute.xlu1 %1453 }
  0x8d   : > { %v617_v47 = vor.u32 %v616_v18, %v612_v11  ;;  %v605_v18 = vor.u32 %v604_v48, %v600_v7  ;;  %v2244_v12 = vshll.u32 %v4765_v19, 16  ;;  %v4788_v11 = vld [vmem:[%s4142_s24 + $0x7c] sm:$0xf] }
  0x8e   : > { %836 = vrot.lane.b32.xlu0 %v796_v50, %s4086_s25  ;;  %v2425_v50 = vsel %vm775_vm0, %v2423_v34, %v2424_v6  ;;  %v2428_v6 = vsel %vm775_vm0, %v2426_v9, %v2427_v37  ;;  %v3492_v37 = vld [vmem:[%s4142_s24 + $0x78] sm:$0xe] }
  0x8f   : > { %838 = vrot.lane.b32.xlu1 %v799_v30, %s4086_s25  ;;  %v4776_v30 = vld [vmem:[%s4142_s24 + $0x80] ss:$0 sps:$4 sm:$0x11]   ;;  %v622_v40 = vsel %vm502_vm1, %v617_v47, %v621_v49  ;;  %v610_v47 = vsel %vm502_vm1, %v605_v18, %v609_v36  ;;  %v4810_v49 = vcombine.low %v330_v58, %v4788_v11  ;;  %v3540_v58 = vcombine.low %v3492_v37, %v4751_v25 }
  0x90   : > { %v4761_v51 = vpop.permute.xlu1 %1439  ;;  %v1438_v42 = vpop.permute.xlu0 %1437  ;;  %v2237_v9 = vshll.u32 %v4776_v30, 16  ;;  %v4837_v25 = vld [vmem:[%s4142_s24 + $0xa0] sm:$0xf] }
  0x91   : > { %v626_v37 = vshll.u32 %v4810_v49, 16 }
  0x92   : > { %2337 = vrot.lane.b32.xlu0 %v2216_v31, %s4087_s26 }
  0x93   : > { %2339 = vrot.lane.b32.xlu1 %v2228_v61, %s4087_s26  ;;  %v2230_v61 = vshrl.u32 %v4768_v57, 16 }
  0x94   : > { %v1326_v34 = vpop.permute.xlu0 %1325 }
  0x95   : > { %v1486_v13 = vsel %vm856_vm3, %v4154_v17, %v1326_v34  ;;  %v1310_v31 = vpop.permute.xlu1 %1309  ;;  %v2246_v34 = vrot.slane %v2244_v12, 1 }
  0x96   : > { %v1470_v7 = vsel %vm856_vm3, %v4170_v33, %v1310_v31  ;;  %2465 = vrot.lane.b32.xlu0 %v2425_v50, %s4086_s25  ;;  %v1518_v48 = vsel %vm889_vm4, %v1486_v13, %v1454_v29  ;;  %v2234_v33 = vrot.slane %v2232_v45, 1  ;;  %v2242_v50 = vshrl.u32 %v4765_v19, 16  ;;  %v4823_v13 = vld [vmem:[%s4142_s24 + $0x8c] ss:$0 sps:$4 sm:$0x11]  }
  0x97   : > { %2467 = vrot.lane.b32.xlu1 %v2428_v6, %s4086_s25  ;;  %v1502_v17 = vsel %vm889_vm4, %v1470_v7, %v1438_v42  ;;  %3798 = vmatprep.mubr.msk.bf16.mxu1 %vm1541_vm5, %v1518_v48  ;;  %v2249_v6 = vshll.u32 %v4781_v56, 16  ;;  %v4816_v42 = vcombine.low %v332_v20, %v4796_v8  ;;  %v3541_v45 = vcombine.low %v3493_v55, %v4745_v4  ;;  %v4826_v31 = vld [vmem:[%s4142_s24 + $0x80] ss:$0 sps:$4 sm:$0x11]   ;;  %v3458_v55 = vld [vmem:[%s4142_s24 + $0x9c] sm:$0xf] }
  0x98   : > { %3782 = vmatprep.mubr.msk.bf16.mxu0 %vm1541_vm5, %v1502_v17  ;;  %v1328_v29 = vpop.permute.xlu0 %1327  ;;  %v802_v4 = vsel %vm775_vm0, %v800_v54, %v801_v27  ;;  %v2239_v48 = vrot.slane %v2237_v9, 1  ;;  %v3456_v17 = vld [vmem:[%s4142_s24 + $0x90] sm:$0xf]  ;;  %v2433_v27 = vrot.slane %v4781_v56, 1  ;;  %v2430_v9 = vrot.slane %v4776_v30, 1 }
  0x99   : > { %v1488_v36 = vsel %vm856_vm3, %v4161_v24, %v1328_v29  ;;  %v1312_v18 = vpop.permute.xlu1 %1311  ;;  %v805_v24 = vsel %vm775_vm0, %v803_v41, %v804_v53  ;;  %v2247_v41 = vor.u32 %v2246_v34, %v2242_v50  ;;  %v2251_v54 = vrot.slane %v2249_v6, 1 }
  0x9a   : > { %v1472_v12 = vsel %vm856_vm3, %v4164_v26, %v1312_v18  ;;  %711 = vrot.lane.b32.xlu0 %v610_v47, %s4087_s26  ;;  %v1520_v20 = vsel %vm889_vm4, %v1488_v36, %v4735_v32  ;;  %v2235_v26 = vor.u32 %v2234_v33, %v2230_v61  ;;  %v4846_v32 = vld [vmem:[%s4142_s24 + $0x94] sm:$0xf]  ;;  %v2432_v47 = vrot.slane %v3541_v45, 1  ;;  %v369_v18 = vld [vmem:[%s4142_s24 + $0x84] sm:$0xe] }
  0x9b   : > { %713 = vrot.lane.b32.xlu1 %v622_v40, %s4087_s26  ;;  %v1504_v7 = vsel %vm889_vm4, %v1472_v12, %v4761_v51  ;;  %3799 = vmatmul.mubr.msk.bf16.vlgmr.msra.gmra.mxu1 %vm1541_vm5, %v1520_v20  ;;  %v638_v40 = vshll.u32 %v4816_v42, 16  ;;  %v2429_v61 = vrot.slane %v3540_v58, 1  ;;  %v4853_v33 = vcombine.low %v3458_v55, %v4837_v25  ;;  %v368_v45 = vld [vmem:[%s4142_s24 + $0x78] sm:$0xe] }
  0x9c   : > { %3783 = vmatmul.mubr.msk.bf16.vlgmr.msra.gmra.mxu0 %vm1541_vm5, %v1504_v7  ;;  %v1330_v53 = vpop.permute.xlu0 %1329  ;;  %v636_v29 = vshrl.u32 %v4816_v42, 16  ;;  %v643_v50 = vshll.u32 %v4823_v13, 16  ;;  %v631_v56 = vshll.u32 %v4826_v31, 16  ;;  %v4860_v34 = vcombine.low %v3456_v17, %v4846_v32  ;;  %v4871_v55 = vld [vmem:[%s4142_s24 + $0xa4] ss:$0 sps:$4 sm:$0x11]  }
  0x9d   : > { %v1332_v51 = vpop.permute.xlu1 %1331  ;;  %5394 = vst [vmem:[#allocation8_spill] sm:$0xff] %v4853_v33  ;;  %v2240_v6 = vsel %vm502_vm1, %v2235_v26, %v2239_v48  ;;  %v624_v30 = vshrl.u32 %v4810_v49, 16  ;;  %v628_v36 = vrot.slane %v626_v37, 1  ;;  %v1490_v58 = vsel %vm856_vm3, %v4193_v60, %v1330_v53  ;;  %v4879_v17 = vld [vmem:[%s4142_s24 + $0x98] ss:$0 sps:$4 sm:$0x11]  }
  0x9e   : > { %840 = vrot.lane.b32.xlu0 %v802_v4, %s4086_s25  ;;  %v2252_v20 = vsel %vm502_vm1, %v2247_v41, %v2251_v54  ;;  %v640_v4 = vrot.slane %v638_v40, 1  ;;  %v2268_v26 = vshll.u32 %v4853_v33, 16  ;;  %v2434_v48 = vsel %vm775_vm0, %v2432_v47, %v2433_v27 }
  0x9f   : > { %842 = vrot.lane.b32.xlu1 %v805_v24, %s4086_s25  ;;  %v645_v60 = vrot.slane %v643_v50, 1  ;;  %v633_v37 = vrot.slane %v631_v56, 1  ;;  %v2256_v53 = vshll.u32 %v4860_v34, 16  ;;  %v2431_v41 = vsel %vm775_vm0, %v2429_v61, %v2430_v9  ;;  %v4896_v61 = vld [vmem:[%s4142_s24 + $0x94] sm:$0xf] }
  0xa0   : > { %v1458_v12 = vpop.permute.xlu0 %1457  ;;  %v629_v54 = vor.u32 %v628_v36, %v624_v30  ;;  %v3283_v40 = vcombine.low %v369_v18, %v4796_v8  ;;  %v1492_v27 = vsel %vm856_vm3, %v4198_v2, %v1332_v51  ;;  %v641_v50 = vor.u32 %v640_v4, %v636_v29  ;;  %v4054_v2 = vld [vmem:[%s5376_s1] sm:$0x3f]   ;;  %v3494_v29 = vld [vmem:[%s4142_s24 + $0x90] sm:$0xe] }
  0xa1   : > { %v1522_v24 = vsel %vm889_vm4, %v1490_v58, %v1458_v12  ;;  %v1314_v7 = vpop.permute.xlu1 %1313  ;;  %v3282_v58 = vcombine.low %v368_v45, %v4788_v11  ;;  %v4888_v12 = vld [vmem:[%s4142_s24 + $0xa0] sm:$0xf]  ;;  %v810_v56 = vrot.slane %v4823_v13, 1  ;;  %v2266_v11 = vshrl.u32 %v4853_v33, 16  ;;  %3886 = vmatprep.subr.msk.bf16.mxu1 %vm1574_vm2, %v4054_v2 }
  0xa2   : > { %3802 = vmatprep.mubr.msk.bf16.mxu1 %vm1541_vm5, %v1522_v24  ;;  %2341 = vrot.lane.b32.xlu0 %v2240_v6, %s4087_s26  ;;  %v336_v6 = vld [vmem:[%s4142_s24 + $0x9c] sm:$0xf]  ;;  %v334_v24 = vld [vmem:[%s4142_s24 + $0x90] sm:$0xf]  ;;  %v2270_v30 = vrot.slane %v2268_v26, 1  ;;  %v2254_v36 = vshrl.u32 %v4860_v34, 16  ;;  %v634_v45 = vsel %vm502_vm1, %v629_v54, %v633_v37 }
  0xa3   : > { %2343 = vrot.lane.b32.xlu1 %v2252_v20, %s4087_s26  ;;  %v2273_v20 = vshll.u32 %v4871_v55, 16  ;;  %v2258_v13 = vrot.slane %v2256_v53, 1  ;;  %v2261_v51 = vshll.u32 %v4879_v17, 16  ;;  %v4909_v18 = vcombine.low %v336_v6, %v4888_v12  ;;  %v4927_v33 = vld [vmem:[%s4142_s24 + $0xa4] ss:$0 sps:$4 sm:$0x11]  }
  0xa4   : > { %v1460_v47 = vpop.permute.xlu0 %1459  ;;  %v806_v4 = vrot.slane %v3282_v58, 1  ;;  %v807_v26 = vrot.slane %v4826_v31, 1  ;;  %v1474_v53 = vsel %vm856_vm3, %v4220_v21, %v1314_v7  ;;  %v646_v6 = vsel %vm502_vm1, %v641_v50, %v645_v60 }
  0xa5   : > { %v1524_v8 = vsel %vm889_vm4, %v1492_v27, %v1460_v47  ;;  %v1316_v9 = vpop.permute.xlu1 %1315  ;;  %v4915_v27 = vcombine.low %v334_v24, %v4896_v61  ;;  %v809_v47 = vrot.slane %v3283_v40, 1  ;;  %v2271_v58 = vor.u32 %v2270_v30, %v2266_v11  ;;  %v4934_v40 = vld [vmem:[%s4142_s24 + $0x98] ss:$0 sps:$4 sm:$0x11]  }
  0xa6   : > { %3803 = vmatmul.mubr.msk.bf16.gmra.mxu1 %vm1541_vm5, %v1524_v8  ;;  %2469 = vrot.lane.b32.xlu0 %v2431_v41, %s4086_s25  ;;  %v3495_v8 = vld [vmem:[%s4142_s24 + $0x9c] sm:$0xe]  ;;  %v1476_v37 = vsel %vm856_vm3, %v4238_v44, %v1316_v9  ;;  %v3542_v24 = vcombine.low %v3494_v29, %v4846_v32  ;;  %v2259_v7 = vor.u32 %v2258_v13, %v2254_v36  ;;  %v2263_v60 = vrot.slane %v2261_v51, 1  ;;  %v4061_v9 = vld [vmem:[%s5376_s1 + $0x10] sm:$0x3f]  }
  0xa7   : > { %2471 = vrot.lane.b32.xlu1 %v2434_v48, %s4086_s25  ;;  %v2275_v48 = vrot.slane %v2273_v20, 1  ;;  %v662_v44 = vshll.u32 %v4909_v18, 16  ;;  %v808_v32 = vsel %vm775_vm0, %v806_v4, %v807_v26  ;;  %v650_v50 = vshll.u32 %v4915_v27, 16  ;;  %v3460_v51 = vld [vmem:[%s4142_s24 + $0xa8] sm:$0xf]  ;;  %3887 = vmatprep.subr.msk.bf16.mxu0 %vm1574_vm2, %v4061_v9 }
  0xa8   : > { %v1442_v41 = vpop.permute.xlu0 %1441  ;;  %v1777_v20 = vsel %vm1574_vm2, %v4054_v2, 0  ;;  %v811_v30 = vsel %vm775_vm0, %v809_v47, %v810_v56  ;;  %v3543_v36 = vcombine.low %v3495_v8, %v4837_v25  ;;  %v2439_v13 = vrot.slane %v4871_v55, 1  ;;  %v4949_v29 = vld [vmem:[%s4142_s24 + $0xac] sm:$0xf]  ;;  %v371_v47 = vld [vmem:[%s4142_s24 + $0x9c] sm:$0xe] }
  0xa9   : > { %v1506_v31 = vsel %vm889_vm4, %v1474_v53, %v1442_v41  ;;  %v1444_v54 = vpop.permute.xlu1 %1443  ;;  %3815 = vmatpush3.bf16.msra.mxu1 %v1777_v20  ;;  %v2276_v4 = vsel %vm502_vm1, %v2271_v58, %v2275_v48  ;;  %v2436_v2 = vrot.slane %v4879_v17, 1  ;;  %v667_v26 = vshll.u32 %v4927_v33, 16  ;;  %v3462_v53 = vld [vmem:[%s4142_s24 + $0xb4] sm:$0xf]  ;;  %v4956_v41 = vld [vmem:[%s4142_s24 + $0xb8] sm:$0xf] }
  0xaa   : > { %v1508_v21 = vsel %vm889_vm4, %v1476_v37, %v1444_v54  ;;  %3786 = vmatprep.mubr.msk.bf16.mxu0 %vm1541_vm5, %v1506_v31  ;;  %715 = vrot.lane.b32.xlu0 %v634_v45, %s4087_s26  ;;  %v2264_v25 = vsel %vm502_vm1, %v2259_v7, %v2263_v60  ;;  %v2435_v55 = vrot.slane %v3542_v24, 1  ;;  %v660_v56 = vshrl.u32 %v4909_v18, 16  ;;  %v370_v37 = vld [vmem:[%s4142_s24 + $0x90] sm:$0xe] }
  0xab   : > { %717 = vrot.lane.b32.xlu1 %v646_v6, %s4087_s26  ;;  %3787 = vmatmul.mubr.msk.bf16.gmra.mxu0 %vm1541_vm5, %v1508_v21  ;;  %v664_v6 = vrot.slane %v662_v44, 1  ;;  %v648_v17 = vshrl.u32 %v4915_v27, 16  ;;  %v652_v48 = vrot.slane %v650_v50, 1  ;;  %v655_v8 = vshll.u32 %v4934_v40, 16 }
  0xac   : > { %v1334_v11 = vpop.permute.xlu0 %1333  ;;  %v4968_v31 = vcombine.low %v3460_v51, %v4949_v29  ;;  %v2438_v24 = vrot.slane %v3543_v36, 1  ;;  %v4973_v21 = vcombine.low %v3462_v53, %v4956_v41  ;;  %v2590_v7 = vsel %vm1574_vm2, %v4061_v9, 0  ;;  %v4985_v9 = vld [vmem:[%s4142_s24 + $0xb0] ss:$0 sps:$4 sm:$0x11]  }
  0xad   : > { %v1336_v45 = vpop.permute.xlu1 %1335  ;;  %v1494_v54 = vsel %vm856_vm3, %v4257_v63, %v1334_v11  ;;  %v3285_v50 = vcombine.low %v371_v47, %v4888_v12  ;;  %3849 = vmatpush3.bf16.msra.mxu0 %v2590_v7  ;;  %v665_v63 = vor.u32 %v664_v6, %v660_v56  ;;  %v3284_v20 = vcombine.low %v370_v37, %v4896_v61  ;;  %v4982_v11 = vld [vmem:[%s4142_s24 + $0xbc] ss:$0 sps:$4 sm:$0x11]   ;;  %v4992_v53 = vld [vmem:[%s4142_s24 + $0xb8] sm:$0xf] }
  0xae   : > { %844 = vrot.lane.b32.xlu0 %v808_v32, %s4086_s25  ;;  %v669_v32 = vrot.slane %v667_v26, 1  ;;  %v653_v36 = vor.u32 %v652_v48, %v648_v17  ;;  %v657_v12 = vrot.slane %v655_v8, 1  ;;  %v2280_v51 = vshll.u32 %v4968_v31, 16  ;;  %v340_v26 = vld [vmem:[%s4142_s24 + $0xb4] sm:$0xf] }
  0xaf   : > { %846 = vrot.lane.b32.xlu1 %v811_v30, %s4086_s25  ;;  %v2437_v30 = vsel %vm775_vm0, %v2435_v55, %v2436_v2  ;;  %v2440_v61 = vsel %vm775_vm0, %v2438_v24, %v2439_v13  ;;  %v2292_v6 = vshll.u32 %v4973_v21, 16  ;;  %v338_v47 = vld [vmem:[%s4142_s24 + $0xa8] sm:$0xf]  ;;  %v5000_v37 = vld [vmem:[%s4142_s24 + $0xac] sm:$0xf]  ;;  %v815_v55 = vrot.slane %v3285_v50, 1 }
  0xb0   : > { %v1462_v58 = vpop.permute.xlu0 %1461  ;;  %v816_v17 = vrot.slane %v4927_v33, 1  ;;  %v813_v48 = vrot.slane %v4934_v40, 1  ;;  %v812_v13 = vrot.slane %v3284_v20, 1  ;;  %v5010_v8 = vcombine.low %v340_v26, %v4992_v53 }
  0xb1   : > { %v1526_v60 = vsel %vm889_vm4, %v1494_v54, %v1462_v58  ;;  %v1318_v44 = vpop.permute.xlu1 %1317  ;;  %v658_v33 = vsel %vm502_vm1, %v653_v36, %v657_v12  ;;  %v2278_v40 = vshrl.u32 %v4968_v31, 16  ;;  %v2282_v54 = vrot.slane %v2280_v51, 1  ;;  %v3496_v58 = vld [vmem:[%s4142_s24 + $0xa8] sm:$0xe]  ;;  %v3497_v12 = vld [vmem:[%s4142_s24 + $0xb4] sm:$0xe] }
  0xb2   : > { %3806 = vmatprep.mubr.msk.bf16.mxu1 %vm1541_vm5, %v1526_v60  ;;  %2345 = vrot.lane.b32.xlu0 %v2264_v25, %s4087_s26  ;;  %v1496_v25 = vsel %vm856_vm3, %v4266_v5, %v1336_v45  ;;  %v670_v5 = vsel %vm502_vm1, %v665_v63, %v669_v32  ;;  %v2285_v45 = vshll.u32 %v4985_v9, 16  ;;  %v5017_v24 = vcombine.low %v338_v47, %v5000_v37  ;;  %v5028_v51 = vld [vmem:[%s4142_s24 + $0xbc] ss:$0 sps:$4 sm:$0x11]  }
  0xb3   : > { %2347 = vrot.lane.b32.xlu1 %v2276_v4, %s4087_s26  ;;  %v1478_v7 = vsel %vm856_vm3, %v4284_v28, %v1318_v44  ;;  %v2290_v32 = vshrl.u32 %v4973_v21, 16  ;;  %v2294_v50 = vrot.slane %v2292_v6, 1  ;;  %v2297_v63 = vshll.u32 %v4982_v11, 16  ;;  %v5040_v6 = vld [vmem:[%s4142_s24 + $0xb0] ss:$0 sps:$4 sm:$0x11]  }
  0xb4   : > { %v1464_v56 = vpop.permute.xlu0 %1463  ;;  %v817_v28 = vsel %vm775_vm0, %v815_v55, %v816_v17  ;;  %v3544_v44 = vcombine.low %v3496_v58, %v4949_v29  ;;  %v674_v47 = vshll.u32 %v5017_v24, 16  ;;  %v3545_v29 = vcombine.low %v3497_v12, %v4956_v41 }
  0xb5   : > { %v1528_v4 = vsel %vm889_vm4, %v1496_v25, %v1464_v56  ;;  %v1320_v2 = vpop.permute.xlu1 %1319  ;;  %v814_v25 = vsel %vm775_vm0, %v812_v13, %v813_v48  ;;  %v2283_v56 = vor.u32 %v2282_v54, %v2278_v40  ;;  %v2299_v55 = vrot.slane %v2297_v63, 1  ;;  %v3466_v40 = vld [vmem:[%s4142_s24 + $0xcc] sm:$0xf]  ;;  %v5053_v54 = vld [vmem:[%s4142_s24 + $0xd0] sm:$0xf] }
  0xb6   : > { %3807 = vmatmul.mubr.msk.bf16.gmra.mxu1 %vm1541_vm5, %v1528_v4  ;;  %2473 = vrot.lane.b32.xlu0 %v2437_v30, %s4086_s25  ;;  %v1480_v20 = vsel %vm856_vm3, %v4299_v43, %v1320_v2  ;;  %v686_v43 = vshll.u32 %v5010_v8, 16  ;;  %v2295_v2 = vor.u32 %v2294_v50, %v2290_v32  ;;  %v2445_v17 = vrot.slane %v4982_v11, 1  ;;  %v373_v50 = vld [vmem:[%s4142_s24 + $0xb4] sm:$0xe]  ;;  %v372_v63 = vld [vmem:[%s4142_s24 + $0xa8] sm:$0xe] }
  0xb7   : > { %2475 = vrot.lane.b32.xlu1 %v2440_v61, %s4086_s25  ;;  %v2287_v61 = vrot.slane %v2285_v45, 1  ;;  %v2442_v13 = vrot.slane %v4985_v9, 1  ;;  %v691_v45 = vshll.u32 %v5028_v51, 16  ;;  %v2441_v58 = vrot.slane %v3544_v44, 1 }
  0xb8   : > { %v1446_v60 = vpop.permute.xlu0 %1445  ;;  %v684_v41 = vshrl.u32 %v5010_v8, 16  ;;  %v672_v11 = vshrl.u32 %v5017_v24, 16  ;;  %v676_v32 = vrot.slane %v674_v47, 1  ;;  %v679_v9 = vshll.u32 %v5040_v6, 16 }
  0xb9   : > { %v1510_v30 = vsel %vm889_vm4, %v1478_v7, %v1446_v60  ;;  %v1448_v36 = vpop.permute.xlu1 %1447  ;;  %v688_v7 = vrot.slane %v686_v43, 1  ;;  %v2288_v60 = vsel %vm502_vm1, %v2283_v56, %v2287_v61  ;;  %v2300_v12 = vsel %vm502_vm1, %v2295_v2, %v2299_v55  ;;  %v5080_v55 = vld [vmem:[%s4142_s24 + $0xc8] ss:$0 sps:$4 sm:$0x11]  }
  0xba   : > { %v1512_v26 = vsel %vm889_vm4, %v1480_v20, %v1448_v36  ;;  %3790 = vmatprep.mubr.msk.bf16.mxu0 %vm1541_vm5, %v1510_v30  ;;  %719 = vrot.lane.b32.xlu0 %v658_v33, %s4087_s26  ;;  %v5047_v33 = vld [vmem:[%s4142_s24 + $0xc4] sm:$0xf]  ;;  %v693_v56 = vrot.slane %v691_v45, 1  ;;  %v3286_v61 = vcombine.low %v372_v63, %v5000_v37  ;;  %v2443_v47 = vsel %vm775_vm0, %v2441_v58, %v2442_v13 }
  0xbb   : > { %721 = vrot.lane.b32.xlu1 %v670_v5, %s4087_s26  ;;  %3791 = vmatmul.mubr.msk.bf16.gmra.mxu0 %vm1541_vm5, %v1512_v26  ;;  %v3464_v5 = vld [vmem:[%s4142_s24 + $0xc0] sm:$0xf]  ;;  %v2444_v26 = vrot.slane %v3545_v29, 1  ;;  %v681_v2 = vrot.slane %v679_v9, 1  ;;  %v822_v13 = vrot.slane %v5028_v51, 1  ;;  %v2309_v51 = vshll.u32 %v5080_v55, 16 }
  0xbc   : > { %v1338_v4 = vpop.permute.xlu0 %1337  ;;  %v5064_v20 = vcombine.low %v3464_v5, %v5047_v33 }
  0xbd   : > { %v1340_v48 = vpop.permute.xlu1 %1339  ;;  %v1498_v30 = vsel %vm856_vm3, %v4319_v0, %v1338_v4  ;;  %v3287_v0 = vcombine.low %v373_v50, %v4992_v53  ;;  %v677_v4 = vor.u32 %v676_v32, %v672_v11  ;;  %v2446_v45 = vsel %vm775_vm0, %v2444_v26, %v2445_v17 }
  0xbe   : > { %848 = vrot.lane.b32.xlu0 %v814_v25, %s4086_s25  ;;  %v689_v25 = vor.u32 %v688_v7, %v684_v41  ;;  %v2304_v29 = vshll.u32 %v5064_v20, 16  ;;  %v1500_v5 = vsel %vm856_vm3, %v4336_v14, %v1340_v48  ;;  %v5087_v41 = vld [vmem:[%s4142_s24 + $0xd4] ss:$0 sps:$4 sm:$0x11]   ;;  %v818_v48 = vrot.slane %v3286_v61, 1 }
  0xbf   : > { %850 = vrot.lane.b32.xlu1 %v817_v28, %s4086_s25  ;;  %v5070_v28 = vcombine.low %v3466_v40, %v5053_v54  ;;  %v821_v14 = vrot.slane %v3287_v0, 1  ;;  %v819_v17 = vrot.slane %v5040_v6, 1  ;;  %v682_v11 = vsel %vm502_vm1, %v677_v4, %v681_v2 }
  0xc0   : > { %v1466_v36 = vpop.permute.xlu0 %1465  ;;  %v694_v58 = vsel %vm502_vm1, %v689_v25, %v693_v56  ;;  %v2306_v32 = vrot.slane %v2304_v29, 1  ;;  %v3499_v25 = vld [vmem:[%s4142_s24 + $0xcc] sm:$0xe]  ;;  %v2311_v0 = vrot.slane %v2309_v51, 1 }
  0xc1   : > { %v1530_v44 = vsel %vm889_vm4, %v1498_v30, %v1466_v36  ;;  %v1322_v43 = vpop.permute.xlu1 %1321  ;;  %v2316_v53 = vshll.u32 %v5070_v28, 16  ;;  %v2314_v63 = vshrl.u32 %v5070_v28, 16  ;;  %v2321_v36 = vshll.u32 %v5087_v41, 16 }
  0xc2   : > { %3810 = vmatprep.mubr.msk.bf16.mxu1 %vm1541_vm5, %v1530_v44  ;;  %2349 = vrot.lane.b32.xlu0 %v2288_v60, %s4087_s26  ;;  %v2302_v60 = vshrl.u32 %v5064_v20, 16  ;;  %v1482_v9 = vsel %vm856_vm3, %v4355_v35, %v1322_v43  ;;  %v820_v35 = vsel %vm775_vm0, %v818_v48, %v819_v17  ;;  %v3547_v29 = vcombine.low %v3499_v25, %v5053_v54 }
  0xc3   : > { %2351 = vrot.lane.b32.xlu1 %v2300_v12, %s4087_s26  ;;  %v2318_v30 = vrot.slane %v2316_v53, 1  ;;  %v3498_v12 = vld [vmem:[%s4142_s24 + $0xc0] sm:$0xe]  ;;  %v2323_v2 = vrot.slane %v2321_v36, 1  ;;  %v2448_v53 = vrot.slane %v5080_v55, 1 }
  0xc4   : > { %v1468_v40 = vpop.permute.xlu0 %1467  ;;  %v2307_v43 = vor.u32 %v2306_v32, %v2302_v60 }
  0xc5   : > { %v1532_v37 = vsel %vm889_vm4, %v1500_v5, %v1468_v40  ;;  %v1324_v7 = vpop.permute.xlu1 %1323  ;;  %v2319_v4 = vor.u32 %v2318_v30, %v2314_v63 }
  0xc6   : > { %3811 = vmatmul.mubr.msk.bf16.gmra.mxu1 %vm1541_vm5, %v1532_v37  ;;  %2477 = vrot.lane.b32.xlu0 %v2443_v47, %s4086_s25  ;;  %v1484_v6 = vsel %vm856_vm3, %v4366_v46, %v1324_v7  ;;  %v3546_v46 = vcombine.low %v3498_v12, %v5047_v33  ;;  %v823_v47 = vsel %vm775_vm0, %v821_v14, %v822_v13  ;;  %v2450_v13 = vrot.slane %v3547_v29, 1 }
  0xc7   : > { %2479 = vrot.lane.b32.xlu1 %v2446_v45, %s4086_s25  ;;  %v2312_v40 = vsel %vm502_vm1, %v2307_v43, %v2311_v0  ;;  %v2324_v7 = vsel %vm502_vm1, %v2319_v4, %v2323_v2 }
  0xc8   : > { %v1450_v50 = vpop.permute.xlu0 %1449  ;;  %v2447_v45 = vrot.slane %v3546_v46, 1 }
  0xc9   : > { %v1514_v26 = vsel %vm889_vm4, %v1482_v9, %v1450_v50  ;;  %v1452_v44 = vpop.permute.xlu1 %1451 }
  0xca   : > { %v1516_v56 = vsel %vm889_vm4, %v1484_v6, %v1452_v44  ;;  %3794 = vmatprep.mubr.msk.bf16.mxu0 %vm1541_vm5, %v1514_v26  ;;  %723 = vrot.lane.b32.xlu0 %v682_v11, %s4087_s26 }
  0xcb   : > { %725 = vrot.lane.b32.xlu1 %v694_v58, %s4087_s26  ;;  %3795 = vmatmul.mubr.msk.bf16.gmra.mxu0 %vm1541_vm5, %v1516_v56  ;;  %v2451_v58 = vrot.slane %v5087_v41, 1 }
  0xcc   : > { %v696_v61 = vpop.permute.xlu0 %695 }
  0xcd   : > { %v698_v5 = vpop.permute.xlu1 %697  ;;  %v858_v33 = vsel %vm856_vm3, %v4402_v23, %v696_v61  ;;  %v2449_v23 = vsel %vm775_vm0, %v2447_v45, %v2448_v53  ;;  %v2452_v41 = vsel %vm775_vm0, %v2450_v13, %v2451_v58  ;;  %v5395_v45 = vld [vmem:[#allocation2_spill] sm:$0xff] }
  0xce   : > { %852 = vrot.lane.b32.xlu0 %v820_v35, %s4086_s25  ;;  %v860_v54 = vsel %vm856_vm3, %v4393_v10, %v698_v5 }
  0xcf   : > { %854 = vrot.lane.b32.xlu1 %v823_v47, %s4086_s25 }
  0xd0   : > { %v825_v37 = vpop.permute.xlu0 %824 }
  0xd1   : > { %v827_v14 = vpop.permute.xlu1 %826  ;;  %v891_v48 = vsel %vm889_vm4, %v858_v33, %v825_v37 }
  0xd2   : > { %v893_v17 = vsel %vm889_vm4, %v860_v54, %v827_v14  ;;  %2353 = vrot.lane.b32.xlu0 %v2312_v40, %s4087_s26  ;;  %3816 = vmatprep.mubr.msk.bf16.mxu1 %vm1541_vm5, %v891_v48  ;;  %v5397_v14 = vld [vmem:[#allocation4_spill] sm:$0xff] }
  0xd3   : > { %2355 = vrot.lane.b32.xlu1 %v2324_v7, %s4087_s26  ;;  %3817 = vmatmul.mubr.msk.bf16.vlgmr.msra.gmra.mxu1 %vm1541_vm5, %v893_v17 }
  0xd4   : > { %v2326_v55 = vpop.permute.xlu0 %2325 }
  0xd5   : > { %v2328_v11 = vpop.permute.xlu1 %2327  ;;  %v2486_v10 = vsel %vm856_vm3, %v4439_v62, %v2326_v55 }
  0xd6   : > { %2481 = vrot.lane.b32.xlu0 %v2449_v23, %s4086_s25  ;;  %v2488_v32 = vsel %vm856_vm3, %v4436_v38, %v2328_v11  ;;  %v5398_v23 = vld [vmem:[#allocation5_spill] sm:$0xff] }
  0xd7   : > { %2483 = vrot.lane.b32.xlu1 %v2452_v41, %s4086_s25 }
  0xd8   : > { %v2454_v60 = vpop.permute.xlu0 %2453 }
  0xd9   : > { %v2456_v51 = vpop.permute.xlu1 %2455  ;;  %v2518_v9 = vsel %vm889_vm4, %v2486_v10, %v2454_v60 }
  0xda   : > { %v2520_v50 = vsel %vm889_vm4, %v2488_v32, %v2456_v51  ;;  %3850 = vmatprep.mubr.msk.bf16.mxu0 %vm1541_vm5, %v2518_v9  ;;  %v5399_v51 = vld [vmem:[#allocation6_spill] sm:$0xff] }
  0xdb   : > { %3851 = vmatmul.mubr.msk.bf16.vlgmr.msra.gmra.mxu0 %vm1541_vm5, %v2520_v50 }
  0xdc   : > { %v700_v63 = vpop.permute.xlu0 %699 }
  0xdd   : > { %v702_v30 = vpop.permute.xlu1 %701  ;;  %v862_v36 = vsel %vm856_vm3, %v4473_v15, %v700_v63  ;;  %v5400_v63 = vld [vmem:[#allocation7_spill] sm:$0xff] }
  0xde   : > { %v864_v62 = vsel %vm856_vm3, %v4482_v52, %v702_v30 }
  0xe0   : > { %v829_v12 = vpop.permute.xlu0 %828 }
  0xe1   : > { %v831_v6 = vpop.permute.xlu1 %830  ;;  %v895_v38 = vsel %vm889_vm4, %v862_v36, %v829_v12 }
  0xe2   : > { %v897_v26 = vsel %vm889_vm4, %v864_v62, %v831_v6  ;;  %3820 = vmatprep.mubr.msk.bf16.mxu1 %vm1541_vm5, %v895_v38 }
  0xe3   : > { %3821 = vmatmul.mubr.msk.bf16.gmra.mxu1 %vm1541_vm5, %v897_v26 }
  0xe4   : > { %v2330_v44 = vpop.permute.xlu0 %2329 }
  0xe5   : > { %v2332_v25 = vpop.permute.xlu1 %2331  ;;  %v2490_v56 = vsel %vm856_vm3, %v4511_v3, %v2330_v44 }
  0xe6   : > { %v2492_v15 = vsel %vm856_vm3, %v4519_v39, %v2332_v25 }
  0xe8   : > { %v2458_v35 = vpop.permute.xlu0 %2457 }
  0xe9   : > { %v2460_v43 = vpop.permute.xlu1 %2459  ;;  %v2522_v52 = vsel %vm889_vm4, %v2490_v56, %v2458_v35 }
  0xea   : > { %v2524_v0 = vsel %vm889_vm4, %v2492_v15, %v2460_v43  ;;  %3854 = vmatprep.mubr.msk.bf16.mxu0 %vm1541_vm5, %v2522_v52 }
  0xeb   : > { %3855 = vmatmul.mubr.msk.bf16.gmra.mxu0 %vm1541_vm5, %v2524_v0 }
  0xec   : > { %v704_v46 = vpop.permute.xlu0 %703 }
  0xed   : > { %v706_v61 = vpop.permute.xlu1 %705  ;;  %v866_v47 = vsel %vm856_vm3, %v4551_v16, %v704_v46  ;;  %v5396_v16 = vld [vmem:[#allocation3_spill] sm:$0xff] }
  0xee   : > { %v868_v3 = vsel %vm856_vm3, %v4548_v22, %v706_v61 }
  0xf0   : > { %v833_v4 = vpop.permute.xlu0 %832 }
  0xf1   : > { %v835_v2 = vpop.permute.xlu1 %834  ;;  %v899_v39 = vsel %vm889_vm4, %v866_v47, %v833_v4 }
  0xf2   : > { %v901_v29 = vsel %vm889_vm4, %v868_v3, %v835_v2  ;;  %3824 = vmatprep.mubr.msk.bf16.mxu1 %vm1541_vm5, %v899_v39 }
  0xf3   : > { %3825 = vmatmul.mubr.msk.bf16.gmra.mxu1 %vm1541_vm5, %v901_v29 }
  0xf4   : > { %v2334_v5 = vpop.permute.xlu0 %2333 }
  0xf5   : > { %v2336_v40 = vpop.permute.xlu1 %2335  ;;  %v2494_v53 = vsel %vm856_vm3, %v5395_v45, %v2334_v5 }
  0xf6   : > { %v2496_v37 = vsel %vm856_vm3, %v5396_v16, %v2336_v40 }
  0xf8   : > { %v2462_v33 = vpop.permute.xlu0 %2461 }
  0xf9   : > { %v2464_v7 = vpop.permute.xlu1 %2463  ;;  %v2526_v22 = vsel %vm889_vm4, %v2494_v53, %v2462_v33 }
  0xfa   : > { %v2528_v13 = vsel %vm889_vm4, %v2496_v37, %v2464_v7  ;;  %3858 = vmatprep.mubr.msk.bf16.mxu0 %vm1541_vm5, %v2526_v22 }
  0xfb   : > { %3859 = vmatmul.mubr.msk.bf16.gmra.mxu0 %vm1541_vm5, %v2528_v13 }
  0xfc   : > { %v708_v58 = vpop.permute.xlu0 %707 }
  0xfd   : > { %v710_v54 = vpop.permute.xlu1 %709  ;;  %v870_v48 = vsel %vm856_vm3, %v5397_v14, %v708_v58 }
  0xfe   : > { %v872_v55 = vsel %vm856_vm3, %v5398_v23, %v710_v54 }
 0x100   : > { %v837_v17 = vpop.permute.xlu0 %836 }
 0x101   : > { %v839_v41 = vpop.permute.xlu1 %838  ;;  %v903_v11 = vsel %vm889_vm4, %v870_v48, %v837_v17 }
 0x102   : > { %v905_v10 = vsel %vm889_vm4, %v872_v55, %v839_v41  ;;  %3828 = vmatprep.mubr.msk.bf16.mxu1 %vm1541_vm5, %v903_v11 }
 0x103   : > { %3829 = vmatmul.mubr.msk.bf16.gmra.mxu1 %vm1541_vm5, %v905_v10 }
 0x104   : > { %v2338_v60 = vpop.permute.xlu0 %2337 }
 0x105   : > { %v2340_v32 = vpop.permute.xlu1 %2339  ;;  %v2498_v9 = vsel %vm856_vm3, %v5399_v51, %v2338_v60 }
 0x106   : > { %v2500_v30 = vsel %vm856_vm3, %v5400_v63, %v2340_v32 }
 0x108   : > { %v2466_v50 = vpop.permute.xlu0 %2465 }
 0x109   : > { %v2468_v36 = vpop.permute.xlu1 %2467  ;;  %v2530_v12 = vsel %vm889_vm4, %v2498_v9, %v2466_v50 }
 0x10a   : > { %v2532_v62 = vsel %vm889_vm4, %v2500_v30, %v2468_v36  ;;  %3862 = vmatprep.mubr.msk.bf16.mxu0 %vm1541_vm5, %v2530_v12 }
 0x10b   : > { %3863 = vmatmul.mubr.msk.bf16.gmra.mxu0 %vm1541_vm5, %v2532_v62 }
 0x10c   : > { %v712_v6 = vpop.permute.xlu0 %711 }
 0x10d   : > { %v714_v38 = vpop.permute.xlu1 %713  ;;  %v874_v26 = vsel %vm856_vm3, %v4722_v1, %v712_v6 }
 0x10e   : > { %v876_v25 = vsel %vm856_vm3, %v4712_v59, %v714_v38 }
 0x110   : > { %v841_v44 = vpop.permute.xlu0 %840 }
 0x111   : > { %v843_v56 = vpop.permute.xlu1 %842  ;;  %v907_v35 = vsel %vm889_vm4, %v874_v26, %v841_v44 }
 0x112   : > { %v909_v15 = vsel %vm889_vm4, %v876_v25, %v843_v56  ;;  %3832 = vmatprep.mubr.msk.bf16.mxu1 %vm1541_vm5, %v907_v35 }
 0x113   : > { %3833 = vmatmul.mubr.msk.bf16.gmra.mxu1 %vm1541_vm5, %v909_v15 }
 0x114   : > { %v2342_v43 = vpop.permute.xlu0 %2341 }
 0x115   : > { %v2344_v52 = vpop.permute.xlu1 %2343  ;;  %v2502_v0 = vsel %vm856_vm3, %v4768_v57, %v2342_v43 }
 0x116   : > { %v2504_v1 = vsel %vm856_vm3, %v4765_v19, %v2344_v52 }
 0x118   : > { %v2470_v46 = vpop.permute.xlu0 %2469 }
 0x119   : > { %v2472_v61 = vpop.permute.xlu1 %2471  ;;  %v2534_v59 = vsel %vm889_vm4, %v2502_v0, %v2470_v46 }
 0x11a   : > { %v2536_v47 = vsel %vm889_vm4, %v2504_v1, %v2472_v61  ;;  %3866 = vmatprep.mubr.msk.bf16.mxu0 %vm1541_vm5, %v2534_v59 }
 0x11b   : > { %3867 = vmatmul.mubr.msk.bf16.gmra.mxu0 %vm1541_vm5, %v2536_v47 }
 0x11c   : > { %v716_v4 = vpop.permute.xlu0 %715 }
 0x11d   : > { %v718_v3 = vpop.permute.xlu1 %717  ;;  %v878_v2 = vsel %vm856_vm3, %v4810_v49, %v716_v4  ;;  %v5401_v49 = vld [vmem:[#allocation8_spill] sm:$0xff] }
 0x11e   : > { %v880_v57 = vsel %vm856_vm3, %v4816_v42, %v718_v3 }
 0x120   : > { %v845_v39 = vpop.permute.xlu0 %844 }
 0x121   : > { %v847_v29 = vpop.permute.xlu1 %846  ;;  %v911_v19 = vsel %vm889_vm4, %v878_v2, %v845_v39 }
 0x122   : > { %v913_v5 = vsel %vm889_vm4, %v880_v57, %v847_v29  ;;  %3836 = vmatprep.mubr.msk.bf16.mxu1 %vm1541_vm5, %v911_v19 }
 0x123   : > { %3837 = vmatmul.mubr.msk.bf16.gmra.mxu1 %vm1541_vm5, %v913_v5 }
 0x124   : > { %v2346_v40 = vpop.permute.xlu0 %2345 }
 0x125   : > { %v2348_v45 = vpop.permute.xlu1 %2347  ;;  %v2506_v53 = vsel %vm856_vm3, %v4860_v34, %v2346_v40 }
 0x126   : > { %v2508_v16 = vsel %vm856_vm3, %v5401_v49, %v2348_v45 }
 0x128   : > { %v2474_v33 = vpop.permute.xlu0 %2473 }
 0x129   : > { %v2476_v37 = vpop.permute.xlu1 %2475  ;;  %v2538_v42 = vsel %vm889_vm4, %v2506_v53, %v2474_v33 }
 0x12a   : > { %v2540_v7 = vsel %vm889_vm4, %v2508_v16, %v2476_v37  ;;  %3870 = vmatprep.mubr.msk.bf16.mxu0 %vm1541_vm5, %v2538_v42 }
 0x12b   : > { %3871 = vmatmul.mubr.msk.bf16.gmra.mxu0 %vm1541_vm5, %v2540_v7 }
 0x12c   : > { %v720_v22 = vpop.permute.xlu0 %719 }
 0x12d   : > { %v722_v13 = vpop.permute.xlu1 %721  ;;  %v882_v58 = vsel %vm856_vm3, %v4915_v27, %v720_v22 }
 0x12e   : > { %v884_v34 = vsel %vm856_vm3, %v4909_v18, %v722_v13 }
 0x130   : > { %v849_v54 = vpop.permute.xlu0 %848 }
 0x131   : > { %v851_v14 = vpop.permute.xlu1 %850  ;;  %v915_v48 = vsel %vm889_vm4, %v882_v58, %v849_v54 }
 0x132   : > { %v917_v17 = vsel %vm889_vm4, %v884_v34, %v851_v14  ;;  %3840 = vmatprep.mubr.msk.bf16.mxu1 %vm1541_vm5, %v915_v48 }
 0x133   : > { %3841 = vmatmul.mubr.msk.bf16.gmra.mxu1 %vm1541_vm5, %v917_v17 }
 0x134   : > { %v2350_v23 = vpop.permute.xlu0 %2349 }
 0x135   : > { %v2352_v55 = vpop.permute.xlu1 %2351  ;;  %v2510_v41 = vsel %vm856_vm3, %v4968_v31, %v2350_v23 }
 0x136   : > { %v2512_v27 = vsel %vm856_vm3, %v4973_v21, %v2352_v55 }
 0x138   : > { %v2478_v11 = vpop.permute.xlu0 %2477 }
 0x139   : > { %v2480_v10 = vpop.permute.xlu1 %2479  ;;  %v2542_v18 = vsel %vm889_vm4, %v2510_v41, %v2478_v11 }
 0x13a   : > { %v2544_v60 = vsel %vm889_vm4, %v2512_v27, %v2480_v10  ;;  %3874 = vmatprep.mubr.msk.bf16.mxu0 %vm1541_vm5, %v2542_v18 }
 0x13b   : > { %3875 = vmatmul.mubr.msk.bf16.gmra.mxu0 %vm1541_vm5, %v2544_v60 }
 0x13c   : > { %v724_v32 = vpop.permute.xlu0 %723 }
 0x13d   : > { %v726_v51 = vpop.permute.xlu1 %725  ;;  %v886_v9 = vsel %vm856_vm3, %v5017_v24, %v724_v32 }
 0x13e   : > { %v888_v31 = vsel %vm856_vm3, %v5010_v8, %v726_v51 }
 0x140   : > { %v853_v50 = vpop.permute.xlu0 %852 }
 0x141   : > { %v855_v63 = vpop.permute.xlu1 %854  ;;  %v919_v21 = vsel %vm889_vm4, %v886_v9, %v853_v50 }
 0x142   : > { %v921_v30 = vsel %vm889_vm4, %v888_v31, %v855_v63  ;;  %3844 = vmatprep.mubr.msk.bf16.mxu1 %vm1541_vm5, %v919_v21 }
 0x143   : > { %3845 = vmatmul.mubr.msk.bf16.gmra.mxu1 %vm1541_vm5, %v921_v30 }
 0x144   : > { %v2354_v36 = vpop.permute.xlu0 %2353 }
 0x145   : > { %v2356_v12 = vpop.permute.xlu1 %2355  ;;  %v2514_v62 = vsel %vm856_vm3, %v5064_v20, %v2354_v36 }
 0x146   : > { %v2516_v24 = vsel %vm856_vm3, %v5070_v28, %v2356_v12 }
 0x148   : > { %v2482_v6 = vpop.permute.xlu0 %2481 }
 0x149   : > { %v2484_v38 = vpop.permute.xlu1 %2483  ;;  %v2546_v8 = vsel %vm889_vm4, %v2514_v62, %v2482_v6 }
 0x14a   : > { %v2548_v26 = vsel %vm889_vm4, %v2516_v24, %v2484_v38  ;;  %3878 = vmatprep.mubr.msk.bf16.mxu0 %vm1541_vm5, %v2546_v8 }
 0x14b   : > { %3879 = vmatmul.mubr.msk.bf16.gmra.mxu0 %vm1541_vm5, %v2548_v26 }
 0x15b   : > { %v5258_v44 = vpop.f32.mrf.mxu1 }
 0x15c   : > { %v3784_v56 = vpop.f32.mrf.mxu0 }
 0x15d   : > { %v5260_v25 = vpop.f32.mrf.mxu1 }
 0x15e   : > { %v1612_v20 = vpop.f32.mrf.mxu0 }
 0x15f   : > { %v5262_v35 = vpop.f32.mrf.mxu1 }
 0x160   : > { %v3785_v43 = vpop.f32.mrf.mxu0 }
 0x161   : > { %v5264_v15 = vpop.f32.mrf.mxu1 }
 0x162   : > { %v1615_v0 = vpop.f32.mrf.mxu0 }
 0x166   : > { %v5266_v28 = vpop.f32.mrf.mxu1 }
 0x168   : > { %v5268_v52 = vpop.f32.mrf.mxu1 }
 0x16a   : > { %v5270_v1 = vpop.f32.mrf.mxu1 }
 0x16b   : > { %v3788_v46 = vpop.f32.mrf.mxu0 }
 0x16c   : > { %v5272_v59 = vpop.f32.mrf.mxu1 }
 0x16d   : > { %v1628_v61 = vpop.f32.mrf.mxu0 }
 0x16f   : > { %v3789_v4 = vpop.f32.mrf.mxu0 }
 0x171   : > { %v1631_v2 = vpop.f32.mrf.mxu0 }
 0x176   : > { %v5274_v47 = vpop.f32.mrf.mxu1 }
 0x178   : > { %v5276_v3 = vpop.f32.mrf.mxu1 }
 0x17a   : > { %v5280_v57 = vpop.f32.mrf.mxu1 }
 0x17b   : > { %v5278_v39 = vpop.f32.mrf.mxu0 }
 0x17c   : > { %v5284_v19 = vpop.f32.mrf.mxu1 }
 0x17d   : > { %v5282_v29 = vpop.f32.mrf.mxu0 }
 0x17f   : > { %v3793_v40 = vpop.f32.mrf.mxu0 }
 0x181   : > { %v1647_v53 = vpop.f32.mrf.mxu0 }
 0x186   : > { %v5286_v5 = vpop.f32.mrf.mxu1 }
 0x188   : > { %v5288_v45 = vpop.f32.mrf.mxu1 }
 0x18a   : > { %v5290_v33 = vpop.f32.mrf.mxu1 }
 0x18b   : > { %v5292_v49 = vpop.f32.mrf.mxu0 }
 0x18c   : > { %v5294_v16 = vpop.f32.mrf.mxu1 }
 0x18d   : > { %v5296_v37 = vpop.f32.mrf.mxu0 }
 0x18f   : > { %v5298_v7 = vpop.f32.mrf.mxu0 }
 0x191   : > { %v5300_v13 = vpop.f32.mrf.mxu0 }
 0x193   : > { %v3818_v42 = vpop.f32.mrf.mxu1 }
 0x194   : > { %v1822_v48 = vadd.f32 %v3818_v42, %v3784_v56 }
 0x195   : > { %v1813_v22 = vpop.f32.mrf.mxu1 }
 0x196   : > { %v1814_v55 = vadd.f32 %v1813_v22, %v1612_v20 }
 0x197   : > { %v3819_v58 = vpop.f32.mrf.mxu1 }
 0x198   : > { %v1825_v17 = vadd.f32 %v3819_v58, %v3785_v43 }
 0x199   : > { %v1816_v34 = vpop.f32.mrf.mxu1 }
 0x19a   : > { %v1817_v41 = vadd.f32 %v1816_v34, %v1615_v0 }
 0x19b   : > { %v3852_v54 = vpop.f32.mrf.mxu0 }
 0x19c   : > { %v2755_v11 = vadd.f32 %v3852_v54, %v1822_v48 }
 0x19d   : > { %v2626_v14 = vpop.f32.mrf.mxu0 }
 0x19e   : > { %v2753_v18 = vadd.f32 %v2626_v14, %v1814_v55 }
 0x19f   : > { %v3853_v23 = vpop.f32.mrf.mxu0 }
 0x1a0   : > { %v2756_v27 = vadd.f32 %v3853_v23, %v1825_v17  ;;  %v2823_v14 = vmul.f32 %v2753_v18, %v2753_v18 }
 0x1a1   : > { %v2629_v10 = vpop.f32.mrf.mxu0 }
 0x1a2   : > { %v3642_v60 = vpack.c.bf16 %v2756_v27, %v2755_v11  ;;  %v2754_v32 = vadd.f32 %v2629_v10, %v1817_v41 }
 0x1a3   : > { %v3822_v51 = vpop.f32.mrf.mxu1 }
 0x1a4   : > { %3714 = vst [vmem:[%s5306_s11 + $0x8] sm:$0xff] %v3642_v60   ;;  %v3637_v9 = vpack.c.bf16 %v2754_v32, %v2753_v18  ;;  %v1838_v36 = vadd.f32 %v3822_v51, %v3788_v46  ;;  %v2824_v46 = vmul.f32 %v2754_v32, %v2754_v32  ;;  %v2785_v48 = vadd.f32 %v2754_v32, %v2753_v18 }
 0x1a5   : > { %v1829_v50 = vpop.f32.mrf.mxu1 }
 0x1a6   : > { %3638 = vst [vmem:[%s5306_s11] sm:$0xff] %v3637_v9   ;;  %v1830_v6 = vadd.f32 %v1829_v50, %v1628_v61  ;;  %v2855_v60 = vadd.f32 %v2824_v46, %v2823_v14 }
 0x1a7   : > { %v3823_v31 = vpop.f32.mrf.mxu1 }
 0x1a8   : > { %v1841_v12 = vadd.f32 %v3823_v31, %v3789_v4 }
 0x1a9   : > { %v1832_v21 = vpop.f32.mrf.mxu1 }
 0x1aa   : > { %v1833_v24 = vadd.f32 %v1832_v21, %v1631_v2 }
 0x1ab   : > { %v3856_v63 = vpop.f32.mrf.mxu0 }
 0x1ac   : > { %v2759_v38 = vadd.f32 %v3856_v63, %v1838_v36  ;;  %v2825_v63 = vmul.f32 %v2755_v11, %v2755_v11 }
 0x1ad   : > { %v2642_v30 = vpop.f32.mrf.mxu0 }
 0x1ae   : > { %v2757_v56 = vadd.f32 %v2642_v30, %v1830_v6  ;;  %v2856_v18 = vadd.f32 %v2855_v60, %v2825_v63 }
 0x1af   : > { %v3857_v62 = vpop.f32.mrf.mxu0 }
 0x1b0   : > { %v5310_v8 = vadd.f32 %v3857_v62, %v1841_v12 }
 0x1b1   : > { %v2645_v26 = vpop.f32.mrf.mxu0 }
 0x1b2   : > { %v3652_v20 = vpack.c.bf16 %v5310_v8, %v2759_v38  ;;  %v2758_v43 = vadd.f32 %v2645_v26, %v1833_v24 }
 0x1b3   : > { %v3826_v0 = vpop.f32.mrf.mxu1 }
 0x1b4   : > { %3716 = vst [vmem:[%s5306_s11 + $0x18] sm:$0xff] %v3652_v20   ;;  %v3647_v42 = vpack.c.bf16 %v2758_v43, %v2757_v56  ;;  %v1854_v61 = vadd.f32 %v3826_v0, %v5278_v39  ;;  %v2786_v39 = vadd.f32 %v2785_v48, %v2755_v11  ;;  %v2828_v62 = vmul.f32 %v2758_v43, %v2758_v43 }
 0x1b5   : > { %v1845_v22 = vpop.f32.mrf.mxu1 }
 0x1b6   : > { %3715 = vst [vmem:[%s5306_s11 + $0x10] sm:$0xff] %v3647_v42   ;;  %v1846_v23 = vadd.f32 %v1845_v22, %v5282_v29  ;;  %v2826_v29 = vmul.f32 %v2756_v27, %v2756_v27  ;;  %v2787_v30 = vadd.f32 %v2786_v39, %v2756_v27 }
 0x1b7   : > { %v3827_v58 = vpop.f32.mrf.mxu1 }
 0x1b8   : > { %v1857_v2 = vadd.f32 %v3827_v58, %v3793_v40  ;;  %v2788_v36 = vadd.f32 %v2787_v30, %v2757_v56  ;;  %v2857_v12 = vadd.f32 %v2856_v18, %v2826_v29 }
 0x1b9   : > { %v1848_v4 = vpop.f32.mrf.mxu1 }
 0x1ba   : > { %v1849_v55 = vadd.f32 %v1848_v4, %v1647_v53  ;;  %v2827_v53 = vmul.f32 %v2757_v56, %v2757_v56  ;;  %v2789_v26 = vadd.f32 %v2788_v36, %v2758_v43 }
 0x1bb   : > { %v3860_v54 = vpop.f32.mrf.mxu0 }
 0x1bc   : > { %v2763_v41 = vadd.f32 %v3860_v54, %v1854_v61  ;;  %v2858_v24 = vadd.f32 %v2857_v12, %v2827_v53  ;;  %v2829_v54 = vmul.f32 %v2759_v38, %v2759_v38  ;;  %v2790_v46 = vadd.f32 %v2789_v26, %v2759_v38 }
 0x1bd   : > { %v2658_v34 = vpop.f32.mrf.mxu0 }
 0x1be   : > { %v2761_v9 = vadd.f32 %v2658_v34, %v1846_v23  ;;  %v2859_v0 = vadd.f32 %v2858_v24, %v2828_v62 }
 0x1bf   : > { %v3861_v17 = vpop.f32.mrf.mxu0 }
 0x1c0   : > { %v5317_v10 = vadd.f32 %v3861_v17, %v1857_v2  ;;  %v2860_v43 = vadd.f32 %v2859_v0, %v2829_v54  ;;  %v2831_v23 = vmul.f32 %v2761_v9, %v2761_v9 }
 0x1c1   : > { %v2661_v51 = vpop.f32.mrf.mxu0 }
 0x1c2   : > { %v3662_v50 = vpack.c.bf16 %v5317_v10, %v2763_v41  ;;  %v2762_v31 = vadd.f32 %v2661_v51, %v1849_v55 }
 0x1c3   : > { %v3830_v40 = vpop.f32.mrf.mxu1 }
 0x1c4   : > { %3718 = vst [vmem:[%s5306_s11 + $0x28] sm:$0xff] %v3662_v50   ;;  %v3657_v21 = vpack.c.bf16 %v2762_v31, %v2761_v9  ;;  %v1870_v11 = vadd.f32 %v3830_v40, %v5292_v49  ;;  %v2830_v49 = vmul.f32 %v5310_v8, %v5310_v8 }
 0x1c5   : > { %v1861_v32 = vpop.f32.mrf.mxu1 }
 0x1c6   : > { %3717 = vst [vmem:[%s5306_s11 + $0x20] sm:$0xff] %v3657_v21   ;;  %v1862_v27 = vadd.f32 %v1861_v32, %v5296_v37  ;;  %v2861_v60 = vadd.f32 %v2860_v43, %v2830_v49  ;;  %v2833_v21 = vmul.f32 %v2763_v41, %v2763_v41 }
 0x1c7   : > { %v3831_v6 = vpop.f32.mrf.mxu1 }
 0x1c8   : > { %v1873_v58 = vadd.f32 %v3831_v6, %v5298_v7  ;;  %v2791_v7 = vadd.f32 %v2790_v46, %v5310_v8  ;;  %v2862_v50 = vadd.f32 %v2861_v60, %v2831_v23 }
 0x1c9   : > { %v1864_v42 = vpop.f32.mrf.mxu1 }
 0x1ca   : > { %v1865_v56 = vadd.f32 %v1864_v42, %v5300_v13  ;;  %v2792_v37 = vadd.f32 %v2791_v7, %v2761_v9  ;;  %v2832_v13 = vmul.f32 %v2762_v31, %v2762_v31  ;;  %v2834_v9 = vmul.f32 %v5317_v10, %v5317_v10 }
 0x1cb   : > { %v3864_v20 = vpop.f32.mrf.mxu0 }
 0x1cc   : > { %v2767_v34 = vadd.f32 %v3864_v20, %v1870_v11  ;;  %v2793_v63 = vadd.f32 %v2792_v37, %v2762_v31  ;;  %v2863_v39 = vadd.f32 %v2862_v50, %v2832_v13 }
 0x1cd   : > { %v2674_v22 = vpop.f32.mrf.mxu0 }
 0x1ce   : > { %v2765_v14 = vadd.f32 %v2674_v22, %v1862_v27  ;;  %v2794_v18 = vadd.f32 %v2793_v63, %v2763_v41  ;;  %v2864_v29 = vadd.f32 %v2863_v39, %v2833_v21 }
 0x1cf   : > { %v3865_v4 = vpop.f32.mrf.mxu0 }
 0x1d0   : > { %v2768_v61 = vadd.f32 %v3865_v4, %v1873_v58  ;;  %v2795_v12 = vadd.f32 %v2794_v18, %v5317_v10  ;;  %v2835_v62 = vmul.f32 %v2765_v14, %v2765_v14  ;;  %v2865_v0 = vadd.f32 %v2864_v29, %v2834_v9 }
 0x1d1   : > { %v2677_v2 = vpop.f32.mrf.mxu0 }
 0x1d2   : > { %v3672_v48 = vpack.c.bf16 %v2768_v61, %v2767_v34  ;;  %v2766_v17 = vadd.f32 %v2677_v2, %v1865_v56  ;;  %v2796_v20 = vadd.f32 %v2795_v12, %v2765_v14  ;;  %v2866_v58 = vadd.f32 %v2865_v0, %v2835_v62 }
 0x1d3   : > { %v3834_v38 = vpop.f32.mrf.mxu1  ;;  %v2838_v2 = vmul.f32 %v2768_v61, %v2768_v61 }
 0x1d4   : > { %3720 = vst [vmem:[%s5306_s11 + $0x38] sm:$0xff] %v3672_v48   ;;  %v3667_v55 = vpack.c.bf16 %v2766_v17, %v2765_v14  ;;  %v1886_v8 = vadd.f32 %v3834_v38, %v5258_v44  ;;  %v2836_v44 = vmul.f32 %v2766_v17, %v2766_v17  ;;  %v2797_v54 = vadd.f32 %v2796_v20, %v2766_v17 }
 0x1d5   : > { %v1877_v51 = vpop.f32.mrf.mxu1 }
 0x1d6   : > { %3719 = vst [vmem:[%s5306_s11 + $0x30] sm:$0xff] %v3667_v55   ;;  %v1878_v6 = vadd.f32 %v1877_v51, %v5260_v25  ;;  %v2867_v4 = vadd.f32 %v2866_v58, %v2836_v44  ;;  %v2837_v25 = vmul.f32 %v2767_v34, %v2767_v34 }
 0x1d7   : > { %v3835_v40 = vpop.f32.mrf.mxu1 }
 0x1d8   : > { %v1889_v36 = vadd.f32 %v3835_v40, %v5262_v35  ;;  %v2868_v56 = vadd.f32 %v2867_v4, %v2837_v25 }
 0x1d9   : > { %v1880_v30 = vpop.f32.mrf.mxu1 }
 0x1da   : > { %v1881_v41 = vadd.f32 %v1880_v30, %v5264_v15  ;;  %v2798_v15 = vadd.f32 %v2797_v54, %v2767_v34  ;;  %v2869_v23 = vadd.f32 %v2868_v56, %v2838_v2 }
 0x1db   : > { %v3868_v32 = vpop.f32.mrf.mxu0 }
 0x1dc   : > { %v2771_v24 = vadd.f32 %v3868_v32, %v1886_v8  ;;  %v2799_v14 = vadd.f32 %v2798_v15, %v2768_v61 }
 0x1dd   : > { %v2690_v53 = vpop.f32.mrf.mxu0 }
 0x1de   : > { %v2769_v35 = vadd.f32 %v2690_v53, %v1878_v6  ;;  %v2841_v53 = vmul.f32 %v2771_v24, %v2771_v24 }
 0x1df   : > { %v3869_v31 = vpop.f32.mrf.mxu0 }
 0x1e0   : > { %v2772_v26 = vadd.f32 %v3869_v31, %v1889_v36  ;;  %v2839_v48 = vmul.f32 %v2769_v35, %v2769_v35  ;;  %v2800_v7 = vadd.f32 %v2799_v14, %v2769_v35 }
 0x1e1   : > { %v2693_v42 = vpop.f32.mrf.mxu0 }
 0x1e2   : > { %v3682_v22 = vpack.c.bf16 %v2772_v26, %v2771_v24  ;;  %v2770_v11 = vadd.f32 %v2693_v42, %v1881_v41  ;;  %v2870_v13 = vadd.f32 %v2869_v23, %v2839_v48 }
 0x1e3   : > { %v3838_v10 = vpop.f32.mrf.mxu1 }
 0x1e4   : > { %3722 = vst [vmem:[%s5306_s11 + $0x48] sm:$0xff] %v3682_v22   ;;  %v3677_v46 = vpack.c.bf16 %v2770_v11, %v2769_v35  ;;  %v2840_v37 = vmul.f32 %v2770_v11, %v2770_v11  ;;  %v1902_v17 = vadd.f32 %v3838_v10, %v5266_v28  ;;  %v2801_v51 = vadd.f32 %v2800_v7, %v2770_v11 }
 0x1e5   : > { %v1893_v27 = vpop.f32.mrf.mxu1 }
 0x1e6   : > { %3721 = vst [vmem:[%s5306_s11 + $0x40] sm:$0xff] %v3677_v46   ;;  %v1894_v34 = vadd.f32 %v1893_v27, %v5268_v52  ;;  %v2871_v21 = vadd.f32 %v2870_v13, %v2840_v37  ;;  %v2802_v30 = vadd.f32 %v2801_v51, %v2771_v24  ;;  %v2842_v52 = vmul.f32 %v2772_v26, %v2772_v26 }
 0x1e7   : > { %v3839_v43 = vpop.f32.mrf.mxu1 }
 0x1e8   : > { %v1905_v60 = vadd.f32 %v3839_v43, %v5270_v1  ;;  %v2872_v36 = vadd.f32 %v2871_v21, %v2841_v53  ;;  %v2803_v9 = vadd.f32 %v2802_v30, %v2772_v26 }
 0x1e9   : > { %v1896_v38 = vpop.f32.mrf.mxu1 }
 0x1ea   : > { %v1897_v61 = vadd.f32 %v1896_v38, %v5272_v59  ;;  %v2873_v31 = vadd.f32 %v2872_v36, %v2842_v52 }
 0x1eb   : > { %v3872_v49 = vpop.f32.mrf.mxu0 }
 0x1ec   : > { %v2775_v63 = vadd.f32 %v3872_v49, %v1902_v17 }
 0x1ed   : > { %v2706_v55 = vpop.f32.mrf.mxu0 }
 0x1ee   : > { %v2773_v18 = vadd.f32 %v2706_v55, %v1894_v34  ;;  %v2845_v58 = vmul.f32 %v2775_v63, %v2775_v63 }
 0x1ef   : > { %v3873_v50 = vpop.f32.mrf.mxu0 }
 0x1f0   : > { %v2776_v39 = vadd.f32 %v3873_v50, %v1905_v60  ;;  %v2843_v12 = vmul.f32 %v2773_v18, %v2773_v18  ;;  %v2804_v62 = vadd.f32 %v2803_v9, %v2773_v18 }
 0x1f1   : > { %v2709_v40 = vpop.f32.mrf.mxu0 }
 0x1f2   : > { %v3692_v32 = vpack.c.bf16 %v2776_v39, %v2775_v63  ;;  %v2774_v29 = vadd.f32 %v2709_v40, %v1897_v61  ;;  %v2874_v0 = vadd.f32 %v2873_v31, %v2843_v12  ;;  %v2846_v14 = vmul.f32 %v2776_v39, %v2776_v39 }
 0x1f3   : > { %v3842_v28 = vpop.f32.mrf.mxu1 }
 0x1f4   : > { %3724 = vst [vmem:[%s5306_s11 + $0x58] sm:$0xff] %v3692_v32   ;;  %v3687_v1 = vpack.c.bf16 %v2774_v29, %v2773_v18  ;;  %v2844_v6 = vmul.f32 %v2774_v29, %v2774_v29  ;;  %v2805_v41 = vadd.f32 %v2804_v62, %v2774_v29  ;;  %v1918_v24 = vadd.f32 %v3842_v28, %v5274_v47 }
 0x1f5   : > { %v1909_v8 = vpop.f32.mrf.mxu1 }
 0x1f6   : > { %3723 = vst [vmem:[%s5306_s11 + $0x50] sm:$0xff] %v3687_v1   ;;  %v2875_v35 = vadd.f32 %v2874_v0, %v2844_v6  ;;  %v1910_v22 = vadd.f32 %v1909_v8, %v5276_v3  ;;  %v2806_v26 = vadd.f32 %v2805_v41, %v2775_v63 }
 0x1f7   : > { %v3843_v59 = vpop.f32.mrf.mxu1 }
 0x1f8   : > { %v1921_v11 = vadd.f32 %v3843_v59, %v5280_v57  ;;  %v2876_v15 = vadd.f32 %v2875_v35, %v2845_v58  ;;  %v2807_v2 = vadd.f32 %v2806_v26, %v2776_v39 }
 0x1f9   : > { %v1912_v44 = vpop.f32.mrf.mxu1 }
 0x1fa   : > { %v1913_v10 = vadd.f32 %v1912_v44, %v5284_v19  ;;  %v2877_v7 = vadd.f32 %v2876_v15, %v2846_v14 }
 0x1fb   : > { %v3876_v20 = vpop.f32.mrf.mxu0 }
 0x1fc   : > { %v2779_v46 = vadd.f32 %v3876_v20, %v1918_v24 }
 0x1fd   : > { %v2722_v42 = vpop.f32.mrf.mxu0 }
 0x1fe   : > { %v2777_v4 = vadd.f32 %v2722_v42, %v1910_v22  ;;  %v2849_v13 = vmul.f32 %v2779_v46, %v2779_v46 }
 0x1ff   : > { %v3877_v54 = vpop.f32.mrf.mxu0 }
 0x200   : > { %v2780_v27 = vadd.f32 %v3877_v54, %v1921_v11  ;;  %v2847_v3 = vmul.f32 %v2777_v4, %v2777_v4  ;;  %v2808_v48 = vadd.f32 %v2807_v2, %v2777_v4 }
 0x201   : > { %v2725_v25 = vpop.f32.mrf.mxu0 }
 0x202   : > { %v3702_v56 = vpack.c.bf16 %v2780_v27, %v2779_v46  ;;  %v2778_v43 = vadd.f32 %v2725_v25, %v1913_v10  ;;  %v2878_v38 = vadd.f32 %v2877_v7, %v2847_v3  ;;  %v2850_v21 = vmul.f32 %v2780_v27, %v2780_v27 }
 0x203   : > { %v3846_v47 = vpop.f32.mrf.mxu1 }
 0x204   : > { %3726 = vst [vmem:[%s5306_s11 + $0x68] sm:$0xff] %v3702_v56   ;;  %v3697_v57 = vpack.c.bf16 %v2778_v43, %v2777_v4  ;;  %v2848_v23 = vmul.f32 %v2778_v43, %v2778_v43  ;;  %v2809_v19 = vadd.f32 %v2808_v48, %v2778_v43  ;;  %v1934_v63 = vadd.f32 %v3846_v47, %v5286_v5 }
 0x205   : > { %v1925_v49 = vpop.f32.mrf.mxu1 }
 0x206   : > { %3725 = vst [vmem:[%s5306_s11 + $0x60] sm:$0xff] %v3697_v57   ;;  %v2879_v37 = vadd.f32 %v2878_v38, %v2848_v23  ;;  %v2810_v17 = vadd.f32 %v2809_v19, %v2779_v46  ;;  %v1926_v51 = vadd.f32 %v1925_v49, %v5288_v45 }
 0x207   : > { %v3847_v55 = vpop.f32.mrf.mxu1 }
 0x208   : > { %v2880_v61 = vadd.f32 %v2879_v37, %v2849_v13  ;;  %v1937_v39 = vadd.f32 %v3847_v55, %v5290_v33  ;;  %v2811_v18 = vadd.f32 %v2810_v17, %v2780_v27 }
 0x209   : > { %v1928_v50 = vpop.f32.mrf.mxu1 }
 0x20a   : > { %v1929_v29 = vadd.f32 %v1928_v50, %v5294_v16  ;;  %v2881_v8 = vadd.f32 %v2880_v61, %v2850_v21 }
 0x20b   : > { %v3880_v60 = vpop.f32.mrf.mxu0 }
 0x20c   : > { %v2783_v30 = vadd.f32 %v3880_v60, %v1934_v63 }
 0x20d   : > { %v2738_v34 = vpop.f32.mrf.mxu0 }
 0x20e   : > { %v2781_v40 = vadd.f32 %v2738_v34, %v1926_v51  ;;  %v2853_v62 = vmul.f32 %v2783_v30, %v2783_v30 }
 0x20f   : > { %v3881_v32 = vpop.f32.mrf.mxu0 }
 0x210   : > { %v2851_v28 = vmul.f32 %v2781_v40, %v2781_v40  ;;  %v2784_v53 = vadd.f32 %v3881_v32, %v1937_v39  ;;  %v2812_v45 = vadd.f32 %v2811_v18, %v2781_v40 }
 0x211   : > { %v2741_v1 = vpop.f32.mrf.mxu0 }
 0x212   : > { %v3712_v36 = vpack.c.bf16 %v2784_v53, %v2783_v30  ;;  %v2782_v9 = vadd.f32 %v2741_v1, %v1929_v29  ;;  %v2882_v52 = vadd.f32 %v2881_v8, %v2851_v28  ;;  %v2854_v16 = vmul.f32 %v2784_v53, %v2784_v53 }
 0x214   : > { %3728 = vst [vmem:[%s5306_s11 + $0x78] sm:$0xff] %v3712_v36   ;;  %v2813_v5 = vadd.f32 %v2812_v45, %v2782_v9  ;;  %v2852_v12 = vmul.f32 %v2782_v9, %v2782_v9  ;;  %v3707_v33 = vpack.c.bf16 %v2782_v9, %v2781_v40 }
 0x216   : > { %v2814_v59 = vadd.f32 %v2813_v5, %v2783_v30  ;;  %v2883_v31 = vadd.f32 %v2882_v52, %v2852_v12  ;;  %3727 = vst [vmem:[%s5306_s11 + $0x70] sm:$0xff] %v3707_v33  }
 0x218   : > { %v2815_v6 = vadd.f32 %v2814_v59, %v2784_v53  ;;  %v2884_v41 = vadd.f32 %v2883_v31, %v2853_v62 }
 0x21a   : > { %v2816_v20 = vrot.slane %v2815_v6, 4  ;;  %v2885_v0 = vadd.f32 %v2884_v41, %v2854_v16 }
 0x21c   : > { %v2817_v44 = vadd.f32 %v2816_v20, %v2815_v6  ;;  %v2886_v42 = vrot.slane %v2885_v0, 4 }
 0x21e   : > { %v2818_v35 = vrot.slane %v2817_v44, 2  ;;  %v2887_v24 = vadd.f32 %v2886_v42, %v2885_v0 }
 0x220   : > { %v2819_v22 = vadd.f32 %v2818_v35, %v2817_v44  ;;  %v2888_v11 = vrot.slane %v2887_v24, 2 }
 0x222   : > { %v2820_v58 = vrot.slane %v2819_v22, 1  ;;  %v2889_v26 = vadd.f32 %v2888_v11, %v2887_v24 }
 0x224   : > { %v2821_v54 = vadd.f32 %v2820_v58, %v2819_v22  ;;  %v2890_v10 = vrot.slane %v2889_v26, 1 }
 0x226   : > { %v2891_v46 = vadd.f32 %v2890_v10, %v2889_v26  ;;  %3053 = vst [vmem:[%s302_s14] sm:$0x1] %v2821_v54 }
 0x228   : > { %3054 = vst [vmem:[%s308_s17] sm:$0x1] %v2891_v46 }
 0x229 PF: > { %s16_s20 = sadd.s32 1, %s4084_s20   ;;  %s5402_s18 = smov %s4080_s19 }
 0x22a   : > { %p13_p5 = scmp.ge.s32.totalorder %s16_s20, 4   ;;  %s5403_s19 = smov %s5405_s2 }
 0x22c   :  { %15 = sbr.rel (!%p13_p5) target bundleno = 2 (0x2), region = 96 }

</bundles_post_ra>
